<compile_context>
chip_gen: v7x
topology: tpu7x:2x2x1
jax: 0.10.0
libtpu: 0.0.40
codegen_flags: <defaults>
</compile_context>

<pallas_src>
import functools

import jax
import jax.numpy as jnp
from jax.experimental import pallas as pl
from jax.experimental.pallas import tpu as pltpu

EPS = 1e-5  # PyTorch nn.LayerNorm default eps

# Row order inside the packed per-layer vector array (must match pack_decoder_params).
_V_LN_G, _V_LN_B, _V_BQ, _V_BKV, _V_BO, _V_FLN_G, _V_FLN_B, _V_B1, _V_B2 = range(9)
_N_VEC = 9


# ----------------------------------------------------------------------------
# In-kernel helpers
# ----------------------------------------------------------------------------
def _layernorm(x, gamma, beta):
    mu = jnp.mean(x, axis=-1, keepdims=True)
    var = jnp.mean((x - mu) ** 2, axis=-1, keepdims=True)
    return (x - mu) * jax.lax.rsqrt(var + EPS) * gamma + beta


# ----------------------------------------------------------------------------
# Fused decoder kernel: grid = (batch, layer)
# ----------------------------------------------------------------------------
def _decoder_kernel(
    # inputs
    seq_ref, pemb_ref, pos_ref, vec_ref,
    wq_ref, wkv_ref, wo_ref, w1_ref, w2_ref,
    # output
    o_ref,
    # scratch (x carry + optional conv pad buffers)
    x_ref, *pad_scratch,
    n_head, d_k, d_v, k1, p1, k2, p2, pad_idx,
):
    layer = pl.program_id(1)
    n_layers = pl.num_programs(1)
    L, D = x_ref.shape
    Hdk = wq_ref.shape[2]
    Dh = w1_ref.shape[3]

    use_pad1 = (k1 > 1) or (p1 > 0)
    use_pad2 = (k2 > 1) or (p2 > 0)
    idx = 0
    pad1_ref = pad_scratch[idx] if use_pad1 else None
    idx += int(use_pad1)
    pad2_ref = pad_scratch[idx] if use_pad2 else None

    pos = pos_ref[0]                                      # [L, 1] int32
    npm = (pos != pad_idx).astype(jnp.float32)            # non-pad mask [L, 1]

    # ---- layer 0: init resident activation (enc_seq + pos_emb), zero conv pads.
    # Halo rows of pad buffers are zeroed ONCE per batch here; conv() only ever
    # writes rows P:P+L, keeping the halo zero across layers.
    @pl.when(layer == 0)
    def _init():
        x_ref[...] = seq_ref[0] + pemb_ref[0]
        if use_pad1:
            pad1_ref[...] = jnp.zeros_like(pad1_ref)
        if use_pad2:
            pad2_ref[...] = jnp.zeros_like(pad2_ref)

    x = x_ref[...]                                         # [L, D] f32

    # Per-layer packed small vectors (f32): LN params + biases.
    vecs = vec_ref[0]                                      # [n_vec, maxW]
    g   = vecs[_V_LN_G:_V_LN_G + 1, :D]
    b   = vecs[_V_LN_B:_V_LN_B + 1, :D]
    bq  = vecs[_V_BQ:_V_BQ + 1, :Hdk]
    bkv = vecs[_V_BKV:_V_BKV + 1, :2 * Hdk]
    bo  = vecs[_V_BO:_V_BO + 1, :D]
    fg  = vecs[_V_FLN_G:_V_FLN_G + 1, :D]
    fb  = vecs[_V_FLN_B:_V_FLN_B + 1, :D]
    b1  = vecs[_V_B1:_V_B1 + 1, :Dh]
    b2  = vecs[_V_B2:_V_B2 + 1, :D]

    # ------------------- multi-head self-attention block -------------------
    xn = _layernorm(x, g, b)                               # only q is pre-normed
    q = jnp.dot(xn.astype(jnp.bfloat16), wq_ref[0],
                preferred_element_type=jnp.float32) + bq
    kv = jnp.dot(x.astype(jnp.bfloat16), wkv_ref[0],       # fused k|v projection
                 preferred_element_type=jnp.float32) + bkv
    k = kv[:, :Hdk]
    v = kv[:, Hdk:]
    q16 = q.astype(jnp.bfloat16)
    k16 = k.astype(jnp.bfloat16)
    v16 = v.astype(jnp.bfloat16)
    wo = wo_ref[0]                                         # bf16 [H*d_v, D]
    inv_temp = 1.0 / (float(d_k) ** 0.5)

    # Small fixed head count -> static unroll; no head concat, each head's
    # context is projected through its slice of wo and accumulated.
    acc = None
    for h in range(n_head):
        qh = q16[:, h * d_k:(h + 1) * d_k]
        kh = k16[:, h * d_k:(h + 1) * d_k]
        vh = v16[:, h * d_v:(h + 1) * d_v]
        # q @ k^T without materializing the transpose (bf16 MXU, f32 acc)
        s = jax.lax.dot_general(qh, kh, (((1,), (1,)), ((), ())),
                                preferred_element_type=jnp.float32) * inv_temp
        s = s - jnp.max(s, axis=-1, keepdims=True)
        e = jnp.exp(s)                                     # f32 EUP
        inv_den = pl.reciprocal(jnp.sum(e, axis=-1, keepdims=True), approx=False)
        p = (e * inv_den).astype(jnp.bfloat16)
        ctx = jnp.dot(p, vh, preferred_element_type=jnp.float32)      # [L, d_v]
        term = jnp.dot(ctx.astype(jnp.bfloat16), wo[h * d_v:(h + 1) * d_v, :],
                       preferred_element_type=jnp.float32)
        acc = term if acc is None else acc + term
    attn_out = acc + bo
    x = _layernorm(attn_out + x, g, b) * npm               # same LN params reused

    # ------------------- position-wise feed-forward block ------------------
    xn = _layernorm(x, fg, fb)

    def conv(inp, w_ref, bias, K, P, pad_ref):
        """1D conv as a K-tap accumulation over shifted views of a pre-zeroed
        padded scratch (no im2col materialization)."""
        if K == 1 and P == 0:
            return jnp.dot(inp.astype(jnp.bfloat16), w_ref[0, 0],
                           preferred_element_type=jnp.float32) + bias
        pad_ref[P:P + L, :] = inp                          # halo rows remain zero
        acc = None
        for kk in range(K):                                # static unroll
            tap = jnp.dot(pad_ref[kk:kk + L, :].astype(jnp.bfloat16), w_ref[0, kk],
                          preferred_element_type=jnp.float32)
            acc = tap if acc is None else acc + tap
        return acc + bias                                  # bias added once

    h1 = jnp.maximum(conv(xn, w1_ref, b1, k1, p1, pad1_ref), 0.0)
    y = conv(h1, w2_ref, b2, k2, p2, pad2_ref)
    x = _layernorm(y + x, fg, fb) * npm

    # carry the activation to the next layer; emit output on the last layer
    x_ref[...] = x

    @pl.when(layer == n_layers - 1)
    def _finalize():
        o_ref[0] = x


# ----------------------------------------------------------------------------
# Wrapper: whole decoder in one pallas_call
# ----------------------------------------------------------------------------
def decoder_forward(enc_seq, enc_pos, packed, cfg):
    B, L, D = enc_seq.shape
    H = cfg.encoder_head
    dk = D // H
    Hdk = H * dk
    K1, K2 = cfg.fft_conv1d_kernel
    P1, P2 = cfg.fft_conv1d_padding
    assert 2 * P1 == K1 - 1 and 2 * P2 == K2 - 1, "conv must preserve sequence length"

    NL = packed["vec"].shape[0]
    n_vec, maxW = packed["vec"].shape[1], packed["vec"].shape[2]
    Dh = packed["w1"].shape[3]

    pos3d = enc_pos.astype(jnp.int32)[..., None]            # [B, L, 1]
    # nn.Embedding gather done once here (single XLA gather, moves only B*L*D).
    pemb = packed["pos_emb"][enc_pos]                        # [B, L, D] f32

    kernel = functools.partial(
        _decoder_kernel, n_head=H, d_k=dk, d_v=dk,
        k1=K1, p1=P1, k2=K2, p2=P2, pad_idx=cfg.PAD)

    # BlockSpec helpers
    def bat(last):      # per-batch activation blocks (constant across layer axis)
        return pl.BlockSpec((1, L, last), lambda b, l: (b, 0, 0))

    def lw(shape):      # per-layer weight blocks, selected by the layer index
        return pl.BlockSpec((1,) + shape, lambda b, l: (l,) + (0,) * len(shape))

    # Conditionally allocate conv pad scratch (dead when K==1, P==0).
    scratch = [pltpu.VMEM((L, D), jnp.float32)]              # resident activation x
    if K1 > 1 or P1 > 0:
        scratch.append(pltpu.VMEM((L + 2 * P1, D), jnp.float32))
    if K2 > 1 or P2 > 0:
        scratch.append(pltpu.VMEM((L + 2 * P2, Dh), jnp.float32))

    # Advisory cost estimate for XLA scheduling around the fused call.
    attn_flops = 2 * L * D * 3 * Hdk + H * 2 * L * L * (dk + dk) + 2 * L * Hdk * D
    ffn_flops = 2 * L * K1 * D * Dh + 2 * L * K2 * Dh * D
    weight_bytes = NL * (2 * (D * Hdk + D * 2 * Hdk + Hdk * D
                              + K1 * D * Dh + K2 * Dh * D)      # bf16 weights
                         + 4 * n_vec * maxW)                    # f32 vec pack
    act_bytes = 4 * (3 * B * L * D + B * L)
    cost = pl.CostEstimate(
        flops=B * NL * (attn_flops + ffn_flops),
        transcendentals=B * NL * (H * L * L + 4 * L),
        bytes_accessed=weight_bytes + act_bytes)

    # Explicit VMEM budget: double-buffered input blocks + output block + scratch.
    blk_bytes = 2 * (4 * (L * D + L * D + L + n_vec * maxW)
                     + 2 * (D * Hdk + D * 2 * Hdk + Hdk * D
                            + K1 * D * Dh + K2 * Dh * D)) + 4 * L * D
    scr_bytes = 4 * (L * D + (L + 2 * P1) * D + (L + 2 * P2) * Dh)
    vmem_limit = int(max(32 * 1024 * 1024, 2 * (blk_bytes + scr_bytes)))

    return pl.pallas_call(
        kernel,
        out_shape=jax.ShapeDtypeStruct((B, L, D), jnp.float32),
        # NOTE: the x_ref layer carry requires the layer axis to stay the LAST
        # (sequential, "arbitrary") grid axis and out_specs' index_map to be
        # constant across it.  Do not reorder the grid.
        grid=(B, NL),
        in_specs=[
            bat(D),                       # enc_seq
            bat(D),                       # gathered position embedding
            bat(1),                       # positions (int32) for the non-pad mask
            lw((n_vec, maxW)),            # packed per-layer LN params + biases (f32)
            lw((D, Hdk)),                 # wq   (bf16)
            lw((D, 2 * Hdk)),             # wk|wv fused (bf16)
            lw((Hdk, D)),                 # wo   (bf16)
            lw((K1, D, Dh)),              # conv1 weight (bf16)
            lw((K2, Dh, D)),              # conv2 weight (bf16)
        ],
        out_specs=bat(D),
        scratch_shapes=scratch,
        compiler_params=pltpu.CompilerParams(
            dimension_semantics=("parallel", "arbitrary"),
            vmem_limit_bytes=vmem_limit),
        cost_estimate=cost,
    )(enc_seq, pemb, pos3d, packed["vec"],
      packed["wq"], packed["wkv"], packed["wo"], packed["w1"], packed["w2"])


# ----------------------------------------------------------------------------
# Parameter packing (wrapper-side layout plumbing, done once)
# ----------------------------------------------------------------------------
def pack_decoder_params(params, cfg):
    """Stack per-layer params on a leading layer axis; fuse wk|wv; pack all tiny
    per-layer vectors into one [NL, 9, maxW] f32 array; cast matmul weights to
    bf16 (halves weight DMA bytes and runs the MXU at native rate)."""
    D = cfg.encoder_dim
    H = cfg.encoder_head
    dk = D // H
    Hdk = H * dk
    layers = params["layers"]
    Dh = layers[0]["w1"].shape[2]
    maxW = max(D, Hdk, 2 * Hdk, Dh)

    def stack(name):
        return jnp.stack([lp[name] for lp in layers], axis=0)

    def row(v):  # [NL, 1, w] -> [NL, 1, maxW] (zero-padded lanes)
        return jnp.pad(v, ((0, 0), (0, 0), (0, maxW - v.shape[-1])))

    bkv = jnp.concatenate([stack("bk"), stack("bv")], axis=-1)      # [NL,1,2Hdk]
    vec = jnp.concatenate([
        row(stack("ln_g")), row(stack("ln_b")),
        row(stack("bq")), row(bkv), row(stack("bo")),
        row(stack("ffn_ln_g")), row(stack("ffn_ln_b")),
        row(stack("b1")), row(stack("b2")),
    ], axis=1).astype(jnp.float32)                                   # [NL, 9, maxW]

    bf16 = lambda a: a.astype(jnp.bfloat16)
    wkv = jnp.concatenate([stack("wk"), stack("wv")], axis=-1)       # [NL, D, 2Hdk]
    return dict(
        pos_emb=params["pos_emb"],        # f32 [n_pos, D], row PAD is zero
        vec=vec,
        wq=bf16(stack("wq")),             # [NL, D, Hdk]
        wkv=bf16(wkv),                    # [NL, D, 2Hdk]
        wo=bf16(stack("wo")),             # [NL, Hdk, D]
        w1=bf16(stack("w1")),             # [NL, K1, D, Dh]
        w2=bf16(stack("w2")),             # [NL, K2, Dh, D]
    )


# ----------------------------------------------------------------------------
# Deterministic parameter init (synthetic, shapes match the PyTorch module)
# ----------------------------------------------------------------------------
def init_decoder_params(key, cfg):
    D = cfg.encoder_dim
    H = cfg.encoder_head
    dk = D // H
    Dh = cfg.encoder_conv1d_filter_size
    K1, K2 = cfg.fft_conv1d_kernel
    n_pos = cfg.max_seq_len + 1
    keys = jax.random.split(key, 1 + cfg.decoder_n_layer)

    tbl = jax.random.normal(keys[0], (n_pos, D), jnp.float32) * 0.1
    tbl = tbl.at[cfg.PAD].set(0.0)      # padding_idx row is zero

    layers = []
    for li in range(cfg.decoder_n_layer):
        ks = jax.random.split(keys[1 + li], 12)
        std_qkv = (2.0 / (D + dk)) ** 0.5
        std_fc = (2.0 / (H * dk + D)) ** 0.5
        lp = dict(
            ln_g=jnp.ones((1, D), jnp.float32),
            ln_b=jnp.zeros((1, D), jnp.float32),
            wq=jax.random.normal(ks[0], (D, H * dk), jnp.float32) * std_qkv,
            bq=jax.random.normal(ks[1], (1, H * dk), jnp.float32) * 0.01,
            wk=jax.random.normal(ks[2], (D, H * dk), jnp.float32) * std_qkv,
            bk=jax.random.normal(ks[3], (1, H * dk), jnp.float32) * 0.01,
            wv=jax.random.normal(ks[4], (D, H * dk), jnp.float32) * std_qkv,
            bv=jax.random.normal(ks[5], (1, H * dk), jnp.float32) * 0.01,
            wo=jax.random.normal(ks[6], (H * dk, D), jnp.float32) * std_fc,
            bo=jax.random.normal(ks[7], (1, D), jnp.float32) * 0.01,
            ffn_ln_g=jnp.ones((1, D), jnp.float32),
            ffn_ln_b=jnp.zeros((1, D), jnp.float32),
            # Conv1d weights pre-transposed to [K, D_in, D_out]
            w1=jax.random.normal(ks[8], (K1, D, Dh), jnp.float32) * (1.0 / (D * K1)) ** 0.5,
            b1=jax.random.normal(ks[9], (1, Dh), jnp.float32) * 0.01,
            w2=jax.random.normal(ks[10], (K2, Dh, D), jnp.float32) * (1.0 / (Dh * K2)) ** 0.5,
            b2=jax.random.normal(ks[11], (1, D), jnp.float32) * 0.01,
        )
        layers.append(lp)
    return dict(pos_emb=tbl, layers=layers)


# ----------------------------------------------------------------------------
# Pure-JAX f32 reference (mirrors the PyTorch forward, eval mode) for validation
# ----------------------------------------------------------------------------
def decoder_reference(enc_seq, enc_pos, params, cfg):
    D = cfg.encoder_dim
    H = cfg.encoder_head
    dk = D // H
    P1, P2 = cfg.fft_conv1d_padding
    B, L, _ = enc_seq.shape

    def ln(v, g, b):
        mu = v.mean(-1, keepdims=True)
        var = ((v - mu) ** 2).mean(-1, keepdims=True)
        return (v - mu) / jnp.sqrt(var + EPS) * g[0] + b[0]

    npm = (enc_pos != cfg.PAD).astype(jnp.float32)[..., None]
    x = enc_seq + params["pos_emb"][enc_pos]
    for lp in params["layers"]:
        xn = ln(x, lp["ln_g"], lp["ln_b"])
        q = xn @ lp["wq"] + lp["bq"][0]
        k = x @ lp["wk"] + lp["bk"][0]
        v = x @ lp["wv"] + lp["bv"][0]
        qh = q.reshape(B, L, H, dk).transpose(0, 2, 1, 3)
        kh = k.reshape(B, L, H, dk).transpose(0, 2, 1, 3)
        vh = v.reshape(B, L, H, dk).transpose(0, 2, 1, 3)
        attn = jnp.einsum("bhqd,bhkd->bhqk", qh, kh) / (dk ** 0.5)
        attn = jax.nn.softmax(attn, axis=-1)
        o = jnp.einsum("bhqk,bhkd->bhqd", attn, vh)
        o = o.transpose(0, 2, 1, 3).reshape(B, L, H * dk)
        o = o @ lp["wo"] + lp["bo"][0]
        x = ln(o + x, lp["ln_g"], lp["ln_b"]) * npm

        xn = ln(x, lp["ffn_ln_g"], lp["ffn_ln_b"])

        def conv(inp, w, bias, P):
            K = w.shape[0]
            inp_p = jnp.pad(inp, ((0, 0), (P, P), (0, 0)))
            out = bias[0]
            for kk in range(K):
                out = out + inp_p[:, kk:kk + L, :] @ w[kk]
            return out

        h = jax.nn.relu(conv(xn, lp["w1"], lp["b1"], P1))
        y = conv(h, lp["w2"], lp["b2"], P2)
        x = ln(y + x, lp["ffn_ln_g"], lp["ffn_ln_b"]) * npm
    return x


# ----------------------------------------------------------------------------
if __name__ == "__main__":
    class ModelConfig:
        max_seq_len = 8
        decoder_n_layer = 2
        encoder_dim = 32
        encoder_head = 2
        encoder_conv1d_filter_size = 64
        fft_conv1d_kernel = (9, 1)
        fft_conv1d_padding = (4, 0)
        PAD = 0
        dropout = 0.1  # eval mode: dropout is identity

    cfg = ModelConfig()
    key = jax.random.PRNGKey(0)
    k_seq, k_par = jax.random.split(key, 2)

    B, L, D = 2, cfg.max_seq_len, cfg.encoder_dim
    enc_seq = jax.random.normal(k_seq, (B, L, D), jnp.float32)
    enc_pos = jnp.array([[1, 2, 3, 4, 5, 6, 7, 8],
                         [1, 2, 3, 4, 5, 0, 0, 0]], dtype=jnp.int32)

    params = init_decoder_params(k_par, cfg)
    packed = pack_decoder_params(params, cfg)     # one-time layout plumbing

    out = decoder_forward(enc_seq, enc_pos, packed, cfg)
    out = jax.block_until_ready(out)

    ref = decoder_reference(enc_seq, enc_pos, params, cfg)
    assert out.shape == (B, L, D)
    max_err = float(jnp.max(jnp.abs(out - ref)))
    # bf16 MXU operands vs the f32 reference -> relaxed tolerance.
    assert jnp.allclose(out, ref, atol=5e-2, rtol=5e-2), f"max abs err {max_err}"

    print("KERNEL_OK")
</pallas_src>

<mosaic_0001>
module attributes {stable_mosaic.version = 11 : i64} {
  func.func @_decoder_kernel(%arg0: i32, %arg1: i32, %arg2: memref<1x8x32xf32, #tpu.memory_space<vmem>>, %arg3: memref<1x8x32xf32, #tpu.memory_space<vmem>>, %arg4: memref<1x8x1xi32, #tpu.memory_space<vmem>>, %arg5: memref<1x9x64xf32, #tpu.memory_space<vmem>>, %arg6: memref<1x32x32xbf16, #tpu.memory_space<vmem>>, %arg7: memref<1x32x64xbf16, #tpu.memory_space<vmem>>, %arg8: memref<1x32x32xbf16, #tpu.memory_space<vmem>>, %arg9: memref<1x9x32x64xbf16, #tpu.memory_space<vmem>>, %arg10: memref<1x1x64x32xbf16, #tpu.memory_space<vmem>>, %arg11: memref<1x8x32xf32, #tpu.memory_space<vmem>>, %arg12: memref<8x32xf32, #tpu.memory_space<vmem>>, %arg13: memref<16x32xf32, #tpu.memory_space<vmem>>) attributes {dimension_semantics = [#tpu.dimension_semantics<parallel>, #tpu.dimension_semantics<arbitrary>], iteration_bounds = array<i64: 2, 2>, scalar_prefetch = 0 : i64, scratch_operands = 2 : i64, tpu.core_type = #tpu.core_type<tc>, window_params = [{transform_indices = @transform_0, window_bounds = array<i64: 1, 8, 32>}, {transform_indices = @transform_1, window_bounds = array<i64: 1, 8, 32>}, {transform_indices = @transform_2, window_bounds = array<i64: 1, 8, 1>}, {transform_indices = @transform_3, window_bounds = array<i64: 1, 9, 64>}, {transform_indices = @transform_4, window_bounds = array<i64: 1, 32, 32>}, {transform_indices = @transform_5, window_bounds = array<i64: 1, 32, 64>}, {transform_indices = @transform_6, window_bounds = array<i64: 1, 32, 32>}, {transform_indices = @transform_7, window_bounds = array<i64: 1, 9, 32, 64>}, {transform_indices = @transform_8, window_bounds = array<i64: 1, 1, 64, 32>}, {transform_indices = @transform_9, window_bounds = array<i64: 1, 8, 32>}]} {
    %c0 = arith.constant 0 : index
    %c0_0 = arith.constant 0 : index
    %c0_1 = arith.constant 0 : index
    %0 = vector.load %arg4[%c0, %c0_0, %c0_1] : memref<1x8x1xi32, #tpu.memory_space<vmem>>, vector<1x8x1xi32>
    %1 = vector.shape_cast %0 : vector<1x8x1xi32> to vector<8x1xi32>
    %c0_i32 = arith.constant 0 : i32
    %2 = vector.broadcast %c0_i32 : i32 to vector<8x1xi32>
    %3 = arith.cmpi ne, %1, %2 : vector<8x1xi32>
    %4 = arith.extui %3 : vector<8x1xi1> to vector<8x1xi32>
    %5 = arith.sitofp %4 : vector<8x1xi32> to vector<8x1xf32>
    %c0_i32_2 = arith.constant 0 : i32
    %6 = arith.cmpi eq, %arg1, %c0_i32_2 : i32
    %7 = arith.extui %6 : i1 to i32
    %c0_i32_3 = arith.constant 0 : i32
    %8 = arith.cmpi ne, %7, %c0_i32_3 : i32
    scf.if %8 {
      %c0_117 = arith.constant 0 : index
      %c0_118 = arith.constant 0 : index
      %c0_119 = arith.constant 0 : index
      %247 = vector.load %arg2[%c0_117, %c0_118, %c0_119] : memref<1x8x32xf32, #tpu.memory_space<vmem>>, vector<1x8x32xf32>
      %248 = vector.shape_cast %247 : vector<1x8x32xf32> to vector<8x32xf32>
      %c0_120 = arith.constant 0 : index
      %c0_121 = arith.constant 0 : index
      %c0_122 = arith.constant 0 : index
      %249 = vector.load %arg3[%c0_120, %c0_121, %c0_122] : memref<1x8x32xf32, #tpu.memory_space<vmem>>, vector<1x8x32xf32>
      %250 = vector.shape_cast %249 : vector<1x8x32xf32> to vector<8x32xf32>
      %251 = arith.addf %248, %250 : vector<8x32xf32>
      %c0_123 = arith.constant 0 : index
      %c0_124 = arith.constant 0 : index
      %252 = vector.load %arg12[%c0_123, %c0_124] : memref<8x32xf32, #tpu.memory_space<vmem>>, vector<8x32xf32>
      tpu.vector_store %arg12[%c0_123, %c0_124], %251 {strides = array<i32>} : memref<8x32xf32, #tpu.memory_space<vmem>>, vector<8x32xf32>,
      %cst_125 = arith.constant 0.000000e+00 : f32
      %253 = vector.broadcast %cst_125 : f32 to vector<16x32xf32>
      %c0_126 = arith.constant 0 : index
      %c0_127 = arith.constant 0 : index
      %254 = vector.load %arg13[%c0_126, %c0_127] : memref<16x32xf32, #tpu.memory_space<vmem>>, vector<16x32xf32>
      tpu.vector_store %arg13[%c0_126, %c0_127], %253 {strides = array<i32>} : memref<16x32xf32, #tpu.memory_space<vmem>>, vector<16x32xf32>,
    } else {
    }
    %c0_4 = arith.constant 0 : index
    %c0_5 = arith.constant 0 : index
    %9 = vector.load %arg12[%c0_4, %c0_5] : memref<8x32xf32, #tpu.memory_space<vmem>>, vector<8x32xf32>
    %c0_6 = arith.constant 0 : index
    %c0_7 = arith.constant 0 : index
    %c0_8 = arith.constant 0 : index
    %10 = vector.load %arg5[%c0_6, %c0_7, %c0_8] : memref<1x9x64xf32, #tpu.memory_space<vmem>>, vector<1x9x64xf32>
    %11 = vector.shape_cast %10 : vector<1x9x64xf32> to vector<9x64xf32>
    %12 = vector.extract_strided_slice %11 {offsets = [0, 0], sizes = [1, 32], strides = [1, 1]} : vector<9x64xf32> to vector<1x32xf32>
    %13 = vector.extract_strided_slice %11 {offsets = [1, 0], sizes = [1, 32], strides = [1, 1]} : vector<9x64xf32> to vector<1x32xf32>
    %14 = vector.extract_strided_slice %11 {offsets = [2, 0], sizes = [1, 32], strides = [1, 1]} : vector<9x64xf32> to vector<1x32xf32>
    %15 = vector.extract_strided_slice %11 {offsets = [3, 0], sizes = [1, 64], strides = [1, 1]} : vector<9x64xf32> to vector<1x64xf32>
    %16 = vector.extract_strided_slice %11 {offsets = [4, 0], sizes = [1, 32], strides = [1, 1]} : vector<9x64xf32> to vector<1x32xf32>
    %17 = vector.extract_strided_slice %11 {offsets = [5, 0], sizes = [1, 32], strides = [1, 1]} : vector<9x64xf32> to vector<1x32xf32>
    %18 = vector.extract_strided_slice %11 {offsets = [6, 0], sizes = [1, 32], strides = [1, 1]} : vector<9x64xf32> to vector<1x32xf32>
    %19 = vector.extract_strided_slice %11 {offsets = [7, 0], sizes = [1, 64], strides = [1, 1]} : vector<9x64xf32> to vector<1x64xf32>
    %20 = vector.extract_strided_slice %11 {offsets = [8, 0], sizes = [1, 32], strides = [1, 1]} : vector<9x64xf32> to vector<1x32xf32>
    %cst = arith.constant dense<0.000000e+00> : vector<8xf32>
    %21 = vector.multi_reduction <add>, %9, %cst [1] : vector<8x32xf32> to vector<8xf32>
    %22 = vector.shape_cast %21 : vector<8xf32> to vector<8x1xf32>
    %cst_9 = arith.constant 3.200000e+01 : f32
    %23 = vector.broadcast %cst_9 : f32 to vector<8x1xf32>
    %24 = arith.divf %22, %23 : vector<8x1xf32>
    %25 = vector.broadcast %24 : vector<8x1xf32> to vector<8x32xf32>
    %26 = arith.subf %9, %25 : vector<8x32xf32>
    %27 = arith.mulf %26, %26 : vector<8x32xf32>
    %cst_10 = arith.constant dense<0.000000e+00> : vector<8xf32>
    %28 = vector.multi_reduction <add>, %27, %cst_10 [1] : vector<8x32xf32> to vector<8xf32>
    %29 = vector.shape_cast %28 : vector<8xf32> to vector<8x1xf32>
    %cst_11 = arith.constant 3.200000e+01 : f32
    %30 = vector.broadcast %cst_11 : f32 to vector<8x1xf32>
    %31 = arith.divf %29, %30 : vector<8x1xf32>
    %32 = vector.broadcast %24 : vector<8x1xf32> to vector<8x32xf32>
    %33 = arith.subf %9, %32 : vector<8x32xf32>
    %cst_12 = arith.constant 9.99999974E-6 : f32
    %34 = vector.broadcast %cst_12 : f32 to vector<8x1xf32>
    %35 = arith.addf %31, %34 : vector<8x1xf32>
    %36 = math.rsqrt %35 : vector<8x1xf32>
    %37 = vector.broadcast %36 : vector<8x1xf32> to vector<8x32xf32>
    %38 = arith.mulf %33, %37 : vector<8x32xf32>
    %39 = vector.broadcast %12 : vector<1x32xf32> to vector<8x32xf32>
    %40 = arith.mulf %38, %39 : vector<8x32xf32>
    %41 = vector.broadcast %13 : vector<1x32xf32> to vector<8x32xf32>
    %42 = arith.addf %40, %41 : vector<8x32xf32>
    %43 = arith.truncf %42 : vector<8x32xf32> to vector<8x32xbf16>
    %c0_13 = arith.constant 0 : index
    %c0_14 = arith.constant 0 : index
    %c0_15 = arith.constant 0 : index
    %44 = vector.load %arg6[%c0_13, %c0_14, %c0_15] : memref<1x32x32xbf16, #tpu.memory_space<vmem>>, vector<1x32x32xbf16>
    %45 = vector.shape_cast %44 : vector<1x32x32xbf16> to vector<32x32xbf16>
    %cst_16 = arith.constant dense<0.000000e+00> : vector<8x32xf32>
    %46 = tpu.matmul %43, %45, %cst_16 {dimension_numbers = #tpu.dot_dimension_numbers<[1], [0], [0], [1], [0, 0, 1, 1], [], []>} : vector<8x32xbf16>, vector<32x32xbf16>, vector<8x32xf32> -> vector<8x32xf32>
    %47 = vector.broadcast %14 : vector<1x32xf32> to vector<8x32xf32>
    %48 = arith.addf %46, %47 : vector<8x32xf32>
    %49 = arith.truncf %9 : vector<8x32xf32> to vector<8x32xbf16>
    %c0_17 = arith.constant 0 : index
    %c0_18 = arith.constant 0 : index
    %c0_19 = arith.constant 0 : index
    %50 = vector.load %arg7[%c0_17, %c0_18, %c0_19] : memref<1x32x64xbf16, #tpu.memory_space<vmem>>, vector<1x32x64xbf16>
    %51 = vector.shape_cast %50 : vector<1x32x64xbf16> to vector<32x64xbf16>
    %cst_20 = arith.constant dense<0.000000e+00> : vector<8x64xf32>
    %52 = tpu.matmul %49, %51, %cst_20 {dimension_numbers = #tpu.dot_dimension_numbers<[1], [0], [0], [1], [0, 0, 1, 1], [], []>} : vector<8x32xbf16>, vector<32x64xbf16>, vector<8x64xf32> -> vector<8x64xf32>
    %53 = vector.broadcast %15 : vector<1x64xf32> to vector<8x64xf32>
    %54 = arith.addf %52, %53 : vector<8x64xf32>
    %55 = vector.extract_strided_slice %54 {offsets = [0, 0], sizes = [8, 32], strides = [1, 1]} : vector<8x64xf32> to vector<8x32xf32>
    %56 = vector.extract_strided_slice %54 {offsets = [0, 32], sizes = [8, 32], strides = [1, 1]} : vector<8x64xf32> to vector<8x32xf32>
    %57 = arith.truncf %48 : vector<8x32xf32> to vector<8x32xbf16>
    %58 = arith.truncf %55 : vector<8x32xf32> to vector<8x32xbf16>
    %59 = arith.truncf %56 : vector<8x32xf32> to vector<8x32xbf16>
    %c0_21 = arith.constant 0 : index
    %c0_22 = arith.constant 0 : index
    %c0_23 = arith.constant 0 : index
    %60 = vector.load %arg8[%c0_21, %c0_22, %c0_23] : memref<1x32x32xbf16, #tpu.memory_space<vmem>>, vector<1x32x32xbf16>
    %61 = vector.shape_cast %60 : vector<1x32x32xbf16> to vector<32x32xbf16>
    %62 = vector.extract_strided_slice %57 {offsets = [0, 0], sizes = [8, 16], strides = [1, 1]} : vector<8x32xbf16> to vector<8x16xbf16>
    %63 = vector.extract_strided_slice %58 {offsets = [0, 0], sizes = [8, 16], strides = [1, 1]} : vector<8x32xbf16> to vector<8x16xbf16>
    %64 = vector.extract_strided_slice %59 {offsets = [0, 0], sizes = [8, 16], strides = [1, 1]} : vector<8x32xbf16> to vector<8x16xbf16>
    %cst_24 = arith.constant dense<0.000000e+00> : vector<8x8xf32>
    %65 = tpu.matmul %62, %63, %cst_24 {dimension_numbers = #tpu.dot_dimension_numbers<[1], [1], [0], [0], [0, 0, 1, 0], [], []>} : vector<8x16xbf16>, vector<8x16xbf16>, vector<8x8xf32> -> vector<8x8xf32>
    %cst_25 = arith.constant 2.500000e-01 : f32
    %66 = vector.broadcast %cst_25 : f32 to vector<8x8xf32>
    %67 = arith.mulf %65, %66 : vector<8x8xf32>
    %cst_26 = arith.constant dense<0xFF800000> : vector<8xf32>
    %68 = vector.multi_reduction <maximumf>, %67, %cst_26 [1] : vector<8x8xf32> to vector<8xf32>
    %69 = vector.shape_cast %68 : vector<8xf32> to vector<8x1xf32>
    %70 = vector.broadcast %69 : vector<8x1xf32> to vector<8x8xf32>
    %71 = arith.subf %67, %70 : vector<8x8xf32>
    %72 = math.exp %71 : vector<8x8xf32>
    %cst_27 = arith.constant dense<0.000000e+00> : vector<8xf32>
    %73 = vector.multi_reduction <add>, %72, %cst_27 [1] : vector<8x8xf32> to vector<8xf32>
    %74 = vector.shape_cast %73 : vector<8xf32> to vector<8x1xf32>
    %75 = tpu.reciprocal %74 : vector<8x1xf32> -> vector<8x1xf32>
    %76 = vector.broadcast %75 : vector<8x1xf32> to vector<8x8xf32>
    %77 = arith.mulf %72, %76 : vector<8x8xf32>
    %78 = arith.truncf %77 : vector<8x8xf32> to vector<8x8xbf16>
    %cst_28 = arith.constant dense<0.000000e+00> : vector<8x16xf32>
    %79 = tpu.matmul %78, %64, %cst_28 {dimension_numbers = #tpu.dot_dimension_numbers<[1], [0], [0], [1], [0, 0, 1, 1], [], []>} : vector<8x8xbf16>, vector<8x16xbf16>, vector<8x16xf32> -> vector<8x16xf32>
    %80 = arith.truncf %79 : vector<8x16xf32> to vector<8x16xbf16>
    %81 = vector.extract_strided_slice %61 {offsets = [0, 0], sizes = [16, 32], strides = [1, 1]} : vector<32x32xbf16> to vector<16x32xbf16>
    %cst_29 = arith.constant dense<0.000000e+00> : vector<8x32xf32>
    %82 = tpu.matmul %80, %81, %cst_29 {dimension_numbers = #tpu.dot_dimension_numbers<[1], [0], [0], [1], [0, 0, 1, 1], [], []>} : vector<8x16xbf16>, vector<16x32xbf16>, vector<8x32xf32> -> vector<8x32xf32>
    %83 = vector.extract_strided_slice %57 {offsets = [0, 16], sizes = [8, 16], strides = [1, 1]} : vector<8x32xbf16> to vector<8x16xbf16>
    %84 = vector.extract_strided_slice %58 {offsets = [0, 16], sizes = [8, 16], strides = [1, 1]} : vector<8x32xbf16> to vector<8x16xbf16>
    %85 = vector.extract_strided_slice %59 {offsets = [0, 16], sizes = [8, 16], strides = [1, 1]} : vector<8x32xbf16> to vector<8x16xbf16>
    %cst_30 = arith.constant dense<0.000000e+00> : vector<8x8xf32>
    %86 = tpu.matmul %83, %84, %cst_30 {dimension_numbers = #tpu.dot_dimension_numbers<[1], [1], [0], [0], [0, 0, 1, 0], [], []>} : vector<8x16xbf16>, vector<8x16xbf16>, vector<8x8xf32> -> vector<8x8xf32>
    %cst_31 = arith.constant 2.500000e-01 : f32
    %87 = vector.broadcast %cst_31 : f32 to vector<8x8xf32>
    %88 = arith.mulf %86, %87 : vector<8x8xf32>
    %cst_32 = arith.constant dense<0xFF800000> : vector<8xf32>
    %89 = vector.multi_reduction <maximumf>, %88, %cst_32 [1] : vector<8x8xf32> to vector<8xf32>
    %90 = vector.shape_cast %89 : vector<8xf32> to vector<8x1xf32>
    %91 = vector.broadcast %90 : vector<8x1xf32> to vector<8x8xf32>
    %92 = arith.subf %88, %91 : vector<8x8xf32>
    %93 = math.exp %92 : vector<8x8xf32>
    %cst_33 = arith.constant dense<0.000000e+00> : vector<8xf32>
    %94 = vector.multi_reduction <add>, %93, %cst_33 [1] : vector<8x8xf32> to vector<8xf32>
    %95 = vector.shape_cast %94 : vector<8xf32> to vector<8x1xf32>
    %96 = tpu.reciprocal %95 : vector<8x1xf32> -> vector<8x1xf32>
    %97 = vector.broadcast %96 : vector<8x1xf32> to vector<8x8xf32>
    %98 = arith.mulf %93, %97 : vector<8x8xf32>
    %99 = arith.truncf %98 : vector<8x8xf32> to vector<8x8xbf16>
    %cst_34 = arith.constant dense<0.000000e+00> : vector<8x16xf32>
    %100 = tpu.matmul %99, %85, %cst_34 {dimension_numbers = #tpu.dot_dimension_numbers<[1], [0], [0], [1], [0, 0, 1, 1], [], []>} : vector<8x8xbf16>, vector<8x16xbf16>, vector<8x16xf32> -> vector<8x16xf32>
    %101 = arith.truncf %100 : vector<8x16xf32> to vector<8x16xbf16>
    %102 = vector.extract_strided_slice %61 {offsets = [16, 0], sizes = [16, 32], strides = [1, 1]} : vector<32x32xbf16> to vector<16x32xbf16>
    %cst_35 = arith.constant dense<0.000000e+00> : vector<8x32xf32>
    %103 = tpu.matmul %101, %102, %cst_35 {dimension_numbers = #tpu.dot_dimension_numbers<[1], [0], [0], [1], [0, 0, 1, 1], [], []>} : vector<8x16xbf16>, vector<16x32xbf16>, vector<8x32xf32> -> vector<8x32xf32>
    %104 = arith.addf %82, %103 : vector<8x32xf32>
    %105 = vector.broadcast %16 : vector<1x32xf32> to vector<8x32xf32>
    %106 = arith.addf %104, %105 : vector<8x32xf32>
    %107 = arith.addf %106, %9 : vector<8x32xf32>
    %cst_36 = arith.constant dense<0.000000e+00> : vector<8xf32>
    %108 = vector.multi_reduction <add>, %107, %cst_36 [1] : vector<8x32xf32> to vector<8xf32>
    %109 = vector.shape_cast %108 : vector<8xf32> to vector<8x1xf32>
    %cst_37 = arith.constant 3.200000e+01 : f32
    %110 = vector.broadcast %cst_37 : f32 to vector<8x1xf32>
    %111 = arith.divf %109, %110 : vector<8x1xf32>
    %112 = vector.broadcast %111 : vector<8x1xf32> to vector<8x32xf32>
    %113 = arith.subf %107, %112 : vector<8x32xf32>
    %114 = arith.mulf %113, %113 : vector<8x32xf32>
    %cst_38 = arith.constant dense<0.000000e+00> : vector<8xf32>
    %115 = vector.multi_reduction <add>, %114, %cst_38 [1] : vector<8x32xf32> to vector<8xf32>
    %116 = vector.shape_cast %115 : vector<8xf32> to vector<8x1xf32>
    %cst_39 = arith.constant 3.200000e+01 : f32
    %117 = vector.broadcast %cst_39 : f32 to vector<8x1xf32>
    %118 = arith.divf %116, %117 : vector<8x1xf32>
    %119 = vector.broadcast %111 : vector<8x1xf32> to vector<8x32xf32>
    %120 = arith.subf %107, %119 : vector<8x32xf32>
    %cst_40 = arith.constant 9.99999974E-6 : f32
    %121 = vector.broadcast %cst_40 : f32 to vector<8x1xf32>
    %122 = arith.addf %118, %121 : vector<8x1xf32>
    %123 = math.rsqrt %122 : vector<8x1xf32>
    %124 = vector.broadcast %123 : vector<8x1xf32> to vector<8x32xf32>
    %125 = arith.mulf %120, %124 : vector<8x32xf32>
    %126 = vector.broadcast %12 : vector<1x32xf32> to vector<8x32xf32>
    %127 = arith.mulf %125, %126 : vector<8x32xf32>
    %128 = vector.broadcast %13 : vector<1x32xf32> to vector<8x32xf32>
    %129 = arith.addf %127, %128 : vector<8x32xf32>
    %130 = vector.broadcast %5 : vector<8x1xf32> to vector<8x32xf32>
    %131 = arith.mulf %129, %130 : vector<8x32xf32>
    %cst_41 = arith.constant dense<0.000000e+00> : vector<8xf32>
    %132 = vector.multi_reduction <add>, %131, %cst_41 [1] : vector<8x32xf32> to vector<8xf32>
    %133 = vector.shape_cast %132 : vector<8xf32> to vector<8x1xf32>
    %cst_42 = arith.constant 3.200000e+01 : f32
    %134 = vector.broadcast %cst_42 : f32 to vector<8x1xf32>
    %135 = arith.divf %133, %134 : vector<8x1xf32>
    %136 = vector.broadcast %135 : vector<8x1xf32> to vector<8x32xf32>
    %137 = arith.subf %131, %136 : vector<8x32xf32>
    %138 = arith.mulf %137, %137 : vector<8x32xf32>
    %cst_43 = arith.constant dense<0.000000e+00> : vector<8xf32>
    %139 = vector.multi_reduction <add>, %138, %cst_43 [1] : vector<8x32xf32> to vector<8xf32>
    %140 = vector.shape_cast %139 : vector<8xf32> to vector<8x1xf32>
    %cst_44 = arith.constant 3.200000e+01 : f32
    %141 = vector.broadcast %cst_44 : f32 to vector<8x1xf32>
    %142 = arith.divf %140, %141 : vector<8x1xf32>
    %143 = vector.broadcast %135 : vector<8x1xf32> to vector<8x32xf32>
    %144 = arith.subf %131, %143 : vector<8x32xf32>
    %cst_45 = arith.constant 9.99999974E-6 : f32
    %145 = vector.broadcast %cst_45 : f32 to vector<8x1xf32>
    %146 = arith.addf %142, %145 : vector<8x1xf32>
    %147 = math.rsqrt %146 : vector<8x1xf32>
    %148 = vector.broadcast %147 : vector<8x1xf32> to vector<8x32xf32>
    %149 = arith.mulf %144, %148 : vector<8x32xf32>
    %150 = vector.broadcast %17 : vector<1x32xf32> to vector<8x32xf32>
    %151 = arith.mulf %149, %150 : vector<8x32xf32>
    %152 = vector.broadcast %18 : vector<1x32xf32> to vector<8x32xf32>
    %153 = arith.addf %151, %152 : vector<8x32xf32>
    %c4 = arith.constant 4 : index
    %c0_46 = arith.constant 0 : index
    %154 = vector.load %arg13[%c4, %c0_46] : memref<16x32xf32, #tpu.memory_space<vmem>>, vector<8x32xf32>
    tpu.vector_store %arg13[%c4, %c0_46], %153 {strides = array<i32>} : memref<16x32xf32, #tpu.memory_space<vmem>>, vector<8x32xf32>,
    %c0_47 = arith.constant 0 : index
    %c0_48 = arith.constant 0 : index
    %155 = vector.load %arg13[%c0_47, %c0_48] : memref<16x32xf32, #tpu.memory_space<vmem>>, vector<8x32xf32>
    %156 = arith.truncf %155 : vector<8x32xf32> to vector<8x32xbf16>
    %c0_49 = arith.constant 0 : index
    %c0_50 = arith.constant 0 : index
    %c0_51 = arith.constant 0 : index
    %c0_52 = arith.constant 0 : index
    %157 = vector.load %arg9[%c0_49, %c0_50, %c0_51, %c0_52] : memref<1x9x32x64xbf16, #tpu.memory_space<vmem>>, vector<1x1x32x64xbf16>
    %158 = vector.shape_cast %157 : vector<1x1x32x64xbf16> to vector<32x64xbf16>
    %cst_53 = arith.constant dense<0.000000e+00> : vector<8x64xf32>
    %159 = tpu.matmul %156, %158, %cst_53 {dimension_numbers = #tpu.dot_dimension_numbers<[1], [0], [0], [1], [0, 0, 1, 1], [], []>} : vector<8x32xbf16>, vector<32x64xbf16>, vector<8x64xf32> -> vector<8x64xf32>
    %c1 = arith.constant 1 : index
    %c0_54 = arith.constant 0 : index
    %160 = vector.load %arg13[%c1, %c0_54] : memref<16x32xf32, #tpu.memory_space<vmem>>, vector<8x32xf32>
    %161 = arith.truncf %160 : vector<8x32xf32> to vector<8x32xbf16>
    %c0_55 = arith.constant 0 : index
    %c1_56 = arith.constant 1 : index
    %c0_57 = arith.constant 0 : index
    %c0_58 = arith.constant 0 : index
    %162 = vector.load %arg9[%c0_55, %c1_56, %c0_57, %c0_58] : memref<1x9x32x64xbf16, #tpu.memory_space<vmem>>, vector<1x1x32x64xbf16>
    %163 = vector.shape_cast %162 : vector<1x1x32x64xbf16> to vector<32x64xbf16>
    %cst_59 = arith.constant dense<0.000000e+00> : vector<8x64xf32>
    %164 = tpu.matmul %161, %163, %cst_59 {dimension_numbers = #tpu.dot_dimension_numbers<[1], [0], [0], [1], [0, 0, 1, 1], [], []>} : vector<8x32xbf16>, vector<32x64xbf16>, vector<8x64xf32> -> vector<8x64xf32>
    %165 = arith.addf %159, %164 : vector<8x64xf32>
    %c2 = arith.constant 2 : index
    %c0_60 = arith.constant 0 : index
    %166 = vector.load %arg13[%c2, %c0_60] : memref<16x32xf32, #tpu.memory_space<vmem>>, vector<8x32xf32>
    %167 = arith.truncf %166 : vector<8x32xf32> to vector<8x32xbf16>
    %c0_61 = arith.constant 0 : index
    %c2_62 = arith.constant 2 : index
    %c0_63 = arith.constant 0 : index
    %c0_64 = arith.constant 0 : index
    %168 = vector.load %arg9[%c0_61, %c2_62, %c0_63, %c0_64] : memref<1x9x32x64xbf16, #tpu.memory_space<vmem>>, vector<1x1x32x64xbf16>
    %169 = vector.shape_cast %168 : vector<1x1x32x64xbf16> to vector<32x64xbf16>
    %cst_65 = arith.constant dense<0.000000e+00> : vector<8x64xf32>
    %170 = tpu.matmul %167, %169, %cst_65 {dimension_numbers = #tpu.dot_dimension_numbers<[1], [0], [0], [1], [0, 0, 1, 1], [], []>} : vector<8x32xbf16>, vector<32x64xbf16>, vector<8x64xf32> -> vector<8x64xf32>
    %171 = arith.addf %165, %170 : vector<8x64xf32>
    %c3 = arith.constant 3 : index
    %c0_66 = arith.constant 0 : index
    %172 = vector.load %arg13[%c3, %c0_66] : memref<16x32xf32, #tpu.memory_space<vmem>>, vector<8x32xf32>
    %173 = arith.truncf %172 : vector<8x32xf32> to vector<8x32xbf16>
    %c0_67 = arith.constant 0 : index
    %c3_68 = arith.constant 3 : index
    %c0_69 = arith.constant 0 : index
    %c0_70 = arith.constant 0 : index
    %174 = vector.load %arg9[%c0_67, %c3_68, %c0_69, %c0_70] : memref<1x9x32x64xbf16, #tpu.memory_space<vmem>>, vector<1x1x32x64xbf16>
    %175 = vector.shape_cast %174 : vector<1x1x32x64xbf16> to vector<32x64xbf16>
    %cst_71 = arith.constant dense<0.000000e+00> : vector<8x64xf32>
    %176 = tpu.matmul %173, %175, %cst_71 {dimension_numbers = #tpu.dot_dimension_numbers<[1], [0], [0], [1], [0, 0, 1, 1], [], []>} : vector<8x32xbf16>, vector<32x64xbf16>, vector<8x64xf32> -> vector<8x64xf32>
    %177 = arith.addf %171, %176 : vector<8x64xf32>
    %c4_72 = arith.constant 4 : index
    %c0_73 = arith.constant 0 : index
    %178 = vector.load %arg13[%c4_72, %c0_73] : memref<16x32xf32, #tpu.memory_space<vmem>>, vector<8x32xf32>
    %179 = arith.truncf %178 : vector<8x32xf32> to vector<8x32xbf16>
    %c0_74 = arith.constant 0 : index
    %c4_75 = arith.constant 4 : index
    %c0_76 = arith.constant 0 : index
    %c0_77 = arith.constant 0 : index
    %180 = vector.load %arg9[%c0_74, %c4_75, %c0_76, %c0_77] : memref<1x9x32x64xbf16, #tpu.memory_space<vmem>>, vector<1x1x32x64xbf16>
    %181 = vector.shape_cast %180 : vector<1x1x32x64xbf16> to vector<32x64xbf16>
    %cst_78 = arith.constant dense<0.000000e+00> : vector<8x64xf32>
    %182 = tpu.matmul %179, %181, %cst_78 {dimension_numbers = #tpu.dot_dimension_numbers<[1], [0], [0], [1], [0, 0, 1, 1], [], []>} : vector<8x32xbf16>, vector<32x64xbf16>, vector<8x64xf32> -> vector<8x64xf32>
    %183 = arith.addf %177, %182 : vector<8x64xf32>
    %c5 = arith.constant 5 : index
    %c0_79 = arith.constant 0 : index
    %184 = vector.load %arg13[%c5, %c0_79] : memref<16x32xf32, #tpu.memory_space<vmem>>, vector<8x32xf32>
    %185 = arith.truncf %184 : vector<8x32xf32> to vector<8x32xbf16>
    %c0_80 = arith.constant 0 : index
    %c5_81 = arith.constant 5 : index
    %c0_82 = arith.constant 0 : index
    %c0_83 = arith.constant 0 : index
    %186 = vector.load %arg9[%c0_80, %c5_81, %c0_82, %c0_83] : memref<1x9x32x64xbf16, #tpu.memory_space<vmem>>, vector<1x1x32x64xbf16>
    %187 = vector.shape_cast %186 : vector<1x1x32x64xbf16> to vector<32x64xbf16>
    %cst_84 = arith.constant dense<0.000000e+00> : vector<8x64xf32>
    %188 = tpu.matmul %185, %187, %cst_84 {dimension_numbers = #tpu.dot_dimension_numbers<[1], [0], [0], [1], [0, 0, 1, 1], [], []>} : vector<8x32xbf16>, vector<32x64xbf16>, vector<8x64xf32> -> vector<8x64xf32>
    %189 = arith.addf %183, %188 : vector<8x64xf32>
    %c6 = arith.constant 6 : index
    %c0_85 = arith.constant 0 : index
    %190 = vector.load %arg13[%c6, %c0_85] : memref<16x32xf32, #tpu.memory_space<vmem>>, vector<8x32xf32>
    %191 = arith.truncf %190 : vector<8x32xf32> to vector<8x32xbf16>
    %c0_86 = arith.constant 0 : index
    %c6_87 = arith.constant 6 : index
    %c0_88 = arith.constant 0 : index
    %c0_89 = arith.constant 0 : index
    %192 = vector.load %arg9[%c0_86, %c6_87, %c0_88, %c0_89] : memref<1x9x32x64xbf16, #tpu.memory_space<vmem>>, vector<1x1x32x64xbf16>
    %193 = vector.shape_cast %192 : vector<1x1x32x64xbf16> to vector<32x64xbf16>
    %cst_90 = arith.constant dense<0.000000e+00> : vector<8x64xf32>
    %194 = tpu.matmul %191, %193, %cst_90 {dimension_numbers = #tpu.dot_dimension_numbers<[1], [0], [0], [1], [0, 0, 1, 1], [], []>} : vector<8x32xbf16>, vector<32x64xbf16>, vector<8x64xf32> -> vector<8x64xf32>
    %195 = arith.addf %189, %194 : vector<8x64xf32>
    %c7 = arith.constant 7 : index
    %c0_91 = arith.constant 0 : index
    %196 = vector.load %arg13[%c7, %c0_91] : memref<16x32xf32, #tpu.memory_space<vmem>>, vector<8x32xf32>
    %197 = arith.truncf %196 : vector<8x32xf32> to vector<8x32xbf16>
    %c0_92 = arith.constant 0 : index
    %c7_93 = arith.constant 7 : index
    %c0_94 = arith.constant 0 : index
    %c0_95 = arith.constant 0 : index
    %198 = vector.load %arg9[%c0_92, %c7_93, %c0_94, %c0_95] : memref<1x9x32x64xbf16, #tpu.memory_space<vmem>>, vector<1x1x32x64xbf16>
    %199 = vector.shape_cast %198 : vector<1x1x32x64xbf16> to vector<32x64xbf16>
    %cst_96 = arith.constant dense<0.000000e+00> : vector<8x64xf32>
    %200 = tpu.matmul %197, %199, %cst_96 {dimension_numbers = #tpu.dot_dimension_numbers<[1], [0], [0], [1], [0, 0, 1, 1], [], []>} : vector<8x32xbf16>, vector<32x64xbf16>, vector<8x64xf32> -> vector<8x64xf32>
    %201 = arith.addf %195, %200 : vector<8x64xf32>
    %c8 = arith.constant 8 : index
    %c0_97 = arith.constant 0 : index
    %202 = vector.load %arg13[%c8, %c0_97] : memref<16x32xf32, #tpu.memory_space<vmem>>, vector<8x32xf32>
    %203 = arith.truncf %202 : vector<8x32xf32> to vector<8x32xbf16>
    %c0_98 = arith.constant 0 : index
    %c8_99 = arith.constant 8 : index
    %c0_100 = arith.constant 0 : index
    %c0_101 = arith.constant 0 : index
    %204 = vector.load %arg9[%c0_98, %c8_99, %c0_100, %c0_101] : memref<1x9x32x64xbf16, #tpu.memory_space<vmem>>, vector<1x1x32x64xbf16>
    %205 = vector.shape_cast %204 : vector<1x1x32x64xbf16> to vector<32x64xbf16>
    %cst_102 = arith.constant dense<0.000000e+00> : vector<8x64xf32>
    %206 = tpu.matmul %203, %205, %cst_102 {dimension_numbers = #tpu.dot_dimension_numbers<[1], [0], [0], [1], [0, 0, 1, 1], [], []>} : vector<8x32xbf16>, vector<32x64xbf16>, vector<8x64xf32> -> vector<8x64xf32>
    %207 = arith.addf %201, %206 : vector<8x64xf32>
    %208 = vector.broadcast %19 : vector<1x64xf32> to vector<8x64xf32>
    %209 = arith.addf %207, %208 : vector<8x64xf32>
    %cst_103 = arith.constant 0.000000e+00 : f32
    %210 = vector.broadcast %cst_103 : f32 to vector<8x64xf32>
    %211 = arith.maximumf %209, %210 : vector<8x64xf32>
    %212 = arith.truncf %211 : vector<8x64xf32> to vector<8x64xbf16>
    %c0_104 = arith.constant 0 : index
    %c0_105 = arith.constant 0 : index
    %c0_106 = arith.constant 0 : index
    %c0_107 = arith.constant 0 : index
    %213 = vector.load %arg10[%c0_104, %c0_105, %c0_106, %c0_107] : memref<1x1x64x32xbf16, #tpu.memory_space<vmem>>, vector<1x1x64x32xbf16>
    %214 = vector.shape_cast %213 : vector<1x1x64x32xbf16> to vector<64x32xbf16>
    %cst_108 = arith.constant dense<0.000000e+00> : vector<8x32xf32>
    %215 = tpu.matmul %212, %214, %cst_108 {dimension_numbers = #tpu.dot_dimension_numbers<[1], [0], [0], [1], [0, 0, 1, 1], [], []>} : vector<8x64xbf16>, vector<64x32xbf16>, vector<8x32xf32> -> vector<8x32xf32>
    %216 = vector.broadcast %20 : vector<1x32xf32> to vector<8x32xf32>
    %217 = arith.addf %215, %216 : vector<8x32xf32>
    %218 = arith.addf %217, %131 : vector<8x32xf32>
    %cst_109 = arith.constant dense<0.000000e+00> : vector<8xf32>
    %219 = vector.multi_reduction <add>, %218, %cst_109 [1] : vector<8x32xf32> to vector<8xf32>
    %220 = vector.shape_cast %219 : vector<8xf32> to vector<8x1xf32>
    %cst_110 = arith.constant 3.200000e+01 : f32
    %221 = vector.broadcast %cst_110 : f32 to vector<8x1xf32>
    %222 = arith.divf %220, %221 : vector<8x1xf32>
    %223 = vector.broadcast %222 : vector<8x1xf32> to vector<8x32xf32>
    %224 = arith.subf %218, %223 : vector<8x32xf32>
    %225 = arith.mulf %224, %224 : vector<8x32xf32>
    %cst_111 = arith.constant dense<0.000000e+00> : vector<8xf32>
    %226 = vector.multi_reduction <add>, %225, %cst_111 [1] : vector<8x32xf32> to vector<8xf32>
    %227 = vector.shape_cast %226 : vector<8xf32> to vector<8x1xf32>
    %cst_112 = arith.constant 3.200000e+01 : f32
    %228 = vector.broadcast %cst_112 : f32 to vector<8x1xf32>
    %229 = arith.divf %227, %228 : vector<8x1xf32>
    %230 = vector.broadcast %222 : vector<8x1xf32> to vector<8x32xf32>
    %231 = arith.subf %218, %230 : vector<8x32xf32>
    %cst_113 = arith.constant 9.99999974E-6 : f32
    %232 = vector.broadcast %cst_113 : f32 to vector<8x1xf32>
    %233 = arith.addf %229, %232 : vector<8x1xf32>
    %234 = math.rsqrt %233 : vector<8x1xf32>
    %235 = vector.broadcast %234 : vector<8x1xf32> to vector<8x32xf32>
    %236 = arith.mulf %231, %235 : vector<8x32xf32>
    %237 = vector.broadcast %17 : vector<1x32xf32> to vector<8x32xf32>
    %238 = arith.mulf %236, %237 : vector<8x32xf32>
    %239 = vector.broadcast %18 : vector<1x32xf32> to vector<8x32xf32>
    %240 = arith.addf %238, %239 : vector<8x32xf32>
    %241 = vector.broadcast %5 : vector<8x1xf32> to vector<8x32xf32>
    %242 = arith.mulf %240, %241 : vector<8x32xf32>
    %c0_114 = arith.constant 0 : index
    %c0_115 = arith.constant 0 : index
    %243 = vector.load %arg12[%c0_114, %c0_115] : memref<8x32xf32, #tpu.memory_space<vmem>>, vector<8x32xf32>
    tpu.vector_store %arg12[%c0_114, %c0_115], %242 {strides = array<i32>} : memref<8x32xf32, #tpu.memory_space<vmem>>, vector<8x32xf32>,
    %c1_i32 = arith.constant 1 : i32
    %244 = arith.cmpi eq, %arg1, %c1_i32 : i32
    %245 = arith.extui %244 : i1 to i32
    %c0_i32_116 = arith.constant 0 : i32
    %246 = arith.cmpi ne, %245, %c0_i32_116 : i32
    scf.if %246 {
      %c0_117 = arith.constant 0 : index
      %c0_118 = arith.constant 0 : index
      %c0_119 = arith.constant 0 : index
      %247 = vector.load %arg11[%c0_117, %c0_118, %c0_119] : memref<1x8x32xf32, #tpu.memory_space<vmem>>, vector<1x8x32xf32>
      %248 = vector.shape_cast %247 : vector<1x8x32xf32> to vector<8x32xf32>
      %249 = vector.shape_cast %242 : vector<8x32xf32> to vector<1x8x32xf32>
      tpu.vector_store %arg11[%c0_117, %c0_118, %c0_119], %249 {strides = array<i32>} : memref<1x8x32xf32, #tpu.memory_space<vmem>>, vector<1x8x32xf32>,
    } else {
    }
    return
  }
  func.func @transform_0(%arg0: i32, %arg1: i32) -> (i32, i32, i32) {
    %c0_i32 = arith.constant 0 : i32
    %c0_i32_0 = arith.constant 0 : i32
    %c0_i32_1 = arith.constant 0 : i32
    return %arg0, %c0_i32, %c0_i32_0 : i32, i32, i32
  }
  func.func @transform_1(%arg0: i32, %arg1: i32) -> (i32, i32, i32) {
    %c0_i32 = arith.constant 0 : i32
    %c0_i32_0 = arith.constant 0 : i32
    %c0_i32_1 = arith.constant 0 : i32
    return %arg0, %c0_i32, %c0_i32_0 : i32, i32, i32
  }
  func.func @transform_2(%arg0: i32, %arg1: i32) -> (i32, i32, i32) {
    %c0_i32 = arith.constant 0 : i32
    %c0_i32_0 = arith.constant 0 : i32
    %c0_i32_1 = arith.constant 0 : i32
    return %arg0, %c0_i32, %c0_i32_0 : i32, i32, i32
  }
  func.func @transform_3(%arg0: i32, %arg1: i32) -> (i32, i32, i32) {
    %c0_i32 = arith.constant 0 : i32
    %c0_i32_0 = arith.constant 0 : i32
    %c0_i32_1 = arith.constant 0 : i32
    return %arg1, %c0_i32, %c0_i32_0 : i32, i32, i32
  }
  func.func @transform_4(%arg0: i32, %arg1: i32) -> (i32, i32, i32) {
    %c0_i32 = arith.constant 0 : i32
    %c0_i32_0 = arith.constant 0 : i32
    %c0_i32_1 = arith.constant 0 : i32
    return %arg1, %c0_i32, %c0_i32_0 : i32, i32, i32
  }
  func.func @transform_5(%arg0: i32, %arg1: i32) -> (i32, i32, i32) {
    %c0_i32 = arith.constant 0 : i32
    %c0_i32_0 = arith.constant 0 : i32
    %c0_i32_1 = arith.constant 0 : i32
    return %arg1, %c0_i32, %c0_i32_0 : i32, i32, i32
  }
  func.func @transform_6(%arg0: i32, %arg1: i32) -> (i32, i32, i32) {
    %c0_i32 = arith.constant 0 : i32
    %c0_i32_0 = arith.constant 0 : i32
    %c0_i32_1 = arith.constant 0 : i32
    return %arg1, %c0_i32, %c0_i32_0 : i32, i32, i32
  }
  func.func @transform_7(%arg0: i32, %arg1: i32) -> (i32, i32, i32, i32) {
    %c0_i32 = arith.constant 0 : i32
    %c0_i32_0 = arith.constant 0 : i32
    %c0_i32_1 = arith.constant 0 : i32
    %c0_i32_2 = arith.constant 0 : i32
    return %arg1, %c0_i32, %c0_i32_0, %c0_i32_1 : i32, i32, i32, i32
  }
  func.func @transform_8(%arg0: i32, %arg1: i32) -> (i32, i32, i32, i32) {
    %c0_i32 = arith.constant 0 : i32
    %c0_i32_0 = arith.constant 0 : i32
    %c0_i32_1 = arith.constant 0 : i32
    %c0_i32_2 = arith.constant 0 : i32
    return %arg1, %c0_i32, %c0_i32_0, %c0_i32_1 : i32, i32, i32, i32
  }
  func.func @transform_9(%arg0: i32, %arg1: i32) -> (i32, i32, i32) {
    %c0_i32 = arith.constant 0 : i32
    %c0_i32_0 = arith.constant 0 : i32
    %c0_i32_1 = arith.constant 0 : i32
    return %arg0, %c0_i32, %c0_i32_0 : i32, i32, i32
  }
}

</mosaic_0001>

<bundles_post_ra>
// kernel: tpu_custom_call.1
= control target key start
LH: loop header
LB: loop body
LE: loop exit
PB: predicated region body
PF: predicated region fallthrough
CT: control target
= control target key end

     0   :  { %s3195_s0 = inlined_call_operand.vmem [shape: f32[2,8,32], index: 0, kind: input, shape index: {}]   ;;  %s3196_s1 = inlined_call_operand.hbm [shape: f32[2,8,32], index: 1, kind: input, shape index: {}]   ;;  %s3197_s2 = inlined_call_operand.vmem [shape: s32[2,8,1], index: 2, kind: input, shape index: {}]   ;;  %s3198_s3 = inlined_call_operand.vmem [shape: f32[2,9,64], index: 3, kind: input, shape index: {}]   ;;  %s3199_s4 = inlined_call_operand.vmem [shape: bf16[2,32,32], index: 4, kind: input, shape index: {}]   ;;  %s3200_s5 = inlined_call_operand.vmem [shape: bf16[2,32,64], index: 5, kind: input, shape index: {}]   ;;  %s3201_s6 = inlined_call_operand.vmem [shape: bf16[2,32,32], index: 6, kind: input, shape index: {}]   ;;  %s3202_s7 = inlined_call_operand.hbm [shape: bf16[2,9,32,64], index: 7, kind: input, shape index: {}]   ;;  %s3203_s8 = inlined_call_operand.vmem [shape: bf16[2,1,64,32], index: 8, kind: input, shape index: {}]   ;;  %s3204_s9 = inlined_call_operand.hbm [shape: f32[2,8,32], index: 9, kind: output, shape index: {}]  }
   0x1   :  { %3220 = sst [smem:[#allocation22_spill]] %s3195_s0 }
   0x2   :  { %3221 = sst [smem:[#allocation23_spill]] %s3196_s1 }
   0x3   :  { %3222 = sst [smem:[#allocation24_spill]] %s3197_s2 }
   0x4   :  { %3223 = sst [smem:[#allocation25_spill]] %s3200_s5 }
   0x5   :  { %3224 = sst [smem:[#allocation26_spill]] %s3201_s6 }
   0x6   :  { %3225 = sst [smem:[#allocation27_spill]] %s3202_s7 }
   0x7   :  { %3226 = sst [smem:[#allocation28_spill]] %s3203_s8 }
   0x8   :  { %3227 = sst [smem:[#allocation29_spill]] %s3204_s9 }
   0x9   :  { %14 = vsyncpa [#allocation5], 0 }
   0xa   :  { %16 = vsyncpa [#allocation5 + $0x1], 0 }
   0xb   :  { %17 = vsyncpa [#allocation8], 0 }
   0xc   :  { %19 = vsyncpa [#allocation8 + $0x1], 0 }
   0xd   :  { %20 = vsyncpa [#allocation6], 0 }
   0xe   :  { %22 = vsyncpa [#allocation6 + $0x1], 0  ;;  %s2676_s30 = smov 0   ;;  %s2678_s10 = smov 0  }
   0xf   :  { %s2680_s11 = smov 0   ;;  %s2682_s12 = smov 0  }
  0x10   :  { %s2684_s13 = smov 0   ;;  %s2686_s14 = smov 0  }
  0x11   :  { %s2688_s15 = smov 0   ;;  %s2690_s16 = smov 0  }
  0x12   :  { %s2692_s17 = smov 0   ;;  %s2694_s18 = smov 0  }
  0x13   :  { %s2696_s19 = smov 0  }
  0x14 LB: > { %3228 = sst [smem:[#allocation13_spill]] %s2584_s12  ;;  %s1962_s20 = sadd.s32 4294967295, %s2612_s19   ;;  %s2612_s19 = sphi %s2696_s19, %s28_s19   ;;  %s2608_s18 = sphi %s2694_s18, %s3270_s18   ;;  %s2604_s17 = sphi %s2692_s17, %s3269_s17   ;;  %s2600_s16 = sphi %s2690_s16, %s3268_s16   ;;  %s2596_s15 = sphi %s2688_s15, %s3267_s15   ;;  %s2592_s14 = sphi %s2686_s14, %s3276_s14   ;;  %s2588_s13 = sphi %s2684_s13, %s3275_s13   ;;  %s2584_s12 = sphi %s2682_s12, %s3274_s12   ;;  %s2580_s11 = sphi %s2680_s11, %s3273_s11   ;;  %s2576_s10 = sphi %s2678_s10, %s3272_s10   ;;  %s2572_s30 = sphi %s2676_s30, %s3271_s30  }
  0x15   : > { %3229 = sst [smem:[#allocation14_spill]] %s2604_s17  ;;  %s1963_s21 = sadd.s32 4294967294, %s2612_s19  }
  0x16   : > { %3230 = sst [smem:[#allocation15_spill]] %s2608_s18  ;;  %p80_p0 = scmp.ne.s32.totalorder %s2592_s14, %s2588_s13 }
  0x17   : > { %3231 = sst [smem:[#allocation16_spill]] %s2612_s19  ;;  %p81_p1 = scmp.eq.s32.totalorder %s2612_s19, 0 }
  0x18   : > { %p86_p2 = scmp.ne.s32.totalorder %s2588_s13, %s2584_s12  ;;  %p87_p3 = scmp.eq.s32.totalorder %s1962_s20, 0 }
  0x19   : > { %p2738_p4 = por %p81_p1, %p80_p0  ;;  %p236_p5 = scmp.ne.s32.totalorder %s2580_s11, %s2576_s10 }
  0x1a   : > { %p2744_p6 = por %p87_p3, %p86_p2  ;;  %p242_p7 = scmp.ne.s32.totalorder %s2576_s10, %s2572_s30 }
  0x1b   : > { %p2749_p8 = por %p236_p5, %p81_p1  ;;  %p292_p9 = scmp.eq.s32.totalorder %s1962_s20, 3 }
  0x1c   : > { %s3233_s25 = scalar_select %p2744_p6, 1, 0 }
  0x1d   : > { %p2753_p10 = por %p242_p7, %p87_p3  ;;  %p298_p11 = scmp.eq.s32.totalorder %s1963_s21, 3 }
  0x1e   : > { %p2757_p12 = por %p292_p9, %p80_p0  ;;  %p2281_p1 = scmp.lt.s32.totalorder %s2612_s19, 4 }
  0x1f   : > { %s3235_s27 = scalar_select %p2753_p10, 1, 0 }
  0x20   : > { %s3236_s28 = scalar_select %p2757_p12, 1, 0 }
  0x21   : > { %p2761_p13 = por %p298_p11, %p86_p2  ;;  %s325_s30 = sand.u32 1, %s2592_s14  }
  0x22   : > { %3237 = sst [smem:[#allocation17_spill]] %s3236_s28  ;;  %s1967_s23 = sshll.u32 %s2608_s18, 7 }
  0x23   : > { %s3238_s29 = scalar_select %p2761_p13, 1, 0 }
  0x24   : > { %s1966_s22 = sshll.u32 %s325_s30, 3  ;;  %s3240_s1 = sld [smem:[#allocation23_spill]] }
  0x25   : > { %3239 = sst [smem:[#allocation18_spill]] %s3238_s29  ;;  %s329_s21 = scalar_lea.vmem [#allocation4], %s1966_s22 }
  0x26   : > { %s336_s8 = sshll.u32 %s329_s21, 4  ;;  %p2775_p0 = pnand %p2281_p1, %p2738_p4  ;;  %s2779_s8 = int_to_ptr.vmem [resolvable:$true] %s336_s8 }
  0x27   : > { %p2783_p2 = pnand %p2281_p1, %p2749_p8  ;;  %s326_s12 = scalar_lea.sflag [#allocation5], %s325_s30 }
  0x28   : > { %p2428_p7 = pneg %p2775_p0 }
  0x2a   : > { %s2771_s20 = scalar_lea.hbm %s3240_s1, %s1967_s23  ;;  %s2431_s21 = scalar_lea.hbm %s3240_s1, 256 }
  0x2b   : > { %s2426_s23 = scalar_lea.hbm %s2771_s20, 128  ;;  %p2432_p8 = scmp.lt.u32.totalorder %s2771_s20, %s3240_s1 }
  0x2c   : > { %p2427_p5 = scmp.ne.s32.totalorder %s2771_s20, %s2426_s23  ;;  %p2433_p11 = scmp.lt.u32.totalorder %s2431_s21, %s2426_s23 }
  0x2d   : > { %p2435_p3 = scmp.lt.u32.totalorder %s2426_s23, %s2771_s20 }
  0x2e   : > { %p2429_p4 = pnand %p2428_p7, %p2427_p5  ;;  %p2434_p1 = por %p2433_p11, %p2432_p8 }
  0x30   : > { %p2430_p9 = pneg %p2429_p4  ;;  %p2436_p13 = por %p2435_p3, %p2434_p1 }
  0x32   : > { %p2437_p12 = pnand %p2436_p13, %p2430_p9 }
  0x34   : > { %2440 = shalt.err (!%p2437_p12)
}
  0x35   : > { %s2441_s30 = scalar_lea.vmem %s2779_s8, 128  ;;  %s2614_s22 = smov [#allocation4]  }
  0x36   : > { %p2442_p5 = scmp.ne.s32.totalorder %s2779_s8, %s2441_s30  ;;  %s2446_s24 = sshll.u32 %s2614_s22, 4  ;;  %s2447_s24 = int_to_ptr.vmem [resolvable:$false] %s2446_s24 }
  0x37   : > { %s2448_s29 = scalar_lea.vmem %s2447_s24, 256  ;;  %p2449_p6 = scmp.lt.s32.totalorder %s2779_s8, %s2447_s24 }
  0x38   : > { %p2444_p4 = pnand %p2442_p5, %p2428_p7  ;;  %p2450_p8 = scmp.lt.s32.totalorder %s2448_s29, %s2441_s30 }
  0x3a   : > { %p2445_p10 = pneg %p2444_p4  ;;  %p2451_p11 = por %p2450_p8, %p2449_p6 }
  0x3c   : > { %p2452_p3 = pnand %p2451_p11, %p2445_p10 }
  0x3e   : > { %2455 = shalt.err (!%p2452_p3)
}
  0x3f   : > { %2273 = dma.hbm_to_vmem [thread:$0]  (!%p2775_p0), %s2771_s20, 128, %s2779_s8, %s326_s12  }
  0x40   : > { %p409_p12 = scmp.lt.s32.totalorder %s2612_s19, 5  ;;  %s229_s23 = sadd.s32 1, %s2580_s11 }
  0x41   : > { %p3243_p6 = scmp.ge.s32.totalorder %s2612_s19, 1  ;;  %s37_s28 = sadd.s32 1, %s2604_s17 }
  0x42   : > { %s382_s26 = sand.u32 1, %s2580_s11   ;;  %p38_p13 = scmp.ge.s32.totalorder %s37_s28, 2 }
  0x43   : > { %p2817_p10 = pnand %p3243_p6, %p409_p12  ;;  %s2261_s30 = smul.u32 144, %s382_s26 }
  0x44   : > { %s3278_s28 = smov (%p38_p13, %s37_s28), 0  ;;  %s3246_s22 = sadd.s32 1, %s2608_s18 }
  0x45   : > { %3245 = sst [smem:[#allocation19_spill]] %s3278_s28  ;;  %s3280_s22 = smov (!%p38_p13, %s3246_s22), %s2608_s18 }
  0x46   : > { %s226_s8 = ssub.s32 %s2604_s17, %s3278_s28  ;;  %p42_p0 = scmp.ge.s32.totalorder %s3280_s22, 2 }
  0x47   : > { %p227_p7 = scmp.eq.s32.totalorder %s226_s8, 0  ;;  %s2262_s20 = smul.u32 2304, %s2604_s17 }
  0x48   : > { %s386_s12 = scalar_lea.vmem [#allocation7], %s2261_s30  ;;  %s3282_s22 = smov (%p42_p0, %s3280_s22), 0 }
  0x49   : > { %s393_s24 = sshll.u32 %s386_s12, 4  ;;  %3247 = sst [smem:[#allocation20_spill]] %s3282_s22  ;;  %s2843_s24 = int_to_ptr.vmem [resolvable:$true] %s393_s24 }
  0x4a   : > { %s2834_s29 = scalar_select %p227_p7, %s2580_s11, %s229_s23  }
  0x4b   : > { %s70_s1 = ssub.s32 %s2608_s18, %s3282_s22  ;;  %s3248_s7 = sld [smem:[#allocation27_spill]] }
  0x4c   : > { %p71_p9 = scmp.eq.s32.totalorder %s70_s1, 0  ;;  %s3249_s30 = sadd.s32 1, %s2592_s14 }
  0x4d   : > { %s2850_s12 = scalar_lea.sflag [#allocation8], %s382_s26  ;;  %p2458_p5 = pneg %p2783_p2 }
  0x4e   : > { %s2848_s8 = scalar_select %p71_p9, %s2592_s14, %s3249_s30  }
  0x50   : > { %3250 = sst [smem:[#allocation21_spill]] %s2848_s8 }
  0x51   : > { %s2841_s5 = scalar_lea.hbm %s3248_s7, %s2262_s20  ;;  %s2461_s20 = scalar_lea.hbm %s3248_s7, 4608 }
  0x52   : > { %s2456_s23 = scalar_lea.hbm %s2841_s5, 2304  ;;  %p2462_p11 = scmp.lt.u32.totalorder %s2841_s5, %s3248_s7 }
  0x53   : > { %p2457_p1 = scmp.ne.s32.totalorder %s2841_s5, %s2456_s23  ;;  %p2463_p3 = scmp.lt.u32.totalorder %s2461_s20, %s2456_s23 }
  0x54   : > { %p2465_p6 = scmp.lt.u32.totalorder %s2456_s23, %s2841_s5 }
  0x55   : > { %p2459_p4 = pnand %p2458_p5, %p2457_p1  ;;  %p2464_p12 = por %p2463_p3, %p2462_p11 }
  0x57   : > { %p2460_p8 = pneg %p2459_p4  ;;  %p2466_p13 = por %p2465_p6, %p2464_p12 }
  0x59   : > { %p2467_p0 = pnand %p2466_p13, %p2460_p8 }
  0x5b   : > { %2470 = shalt.err (!%p2467_p0)
}
  0x5c   : > { %s2471_s26 = scalar_lea.vmem %s2843_s24, 2304  ;;  %s2615_s30 = smov [#allocation7]  }
  0x5d   : > { %p2472_p7 = scmp.ne.s32.totalorder %s2843_s24, %s2471_s26  ;;  %s2476_s6 = sshll.u32 %s2615_s30, 4  ;;  %s2477_s6 = int_to_ptr.vmem [resolvable:$false] %s2476_s6 }
  0x5e   : > { %s2478_s22 = scalar_lea.vmem %s2477_s6, 4608  ;;  %p2479_p4 = scmp.lt.s32.totalorder %s2843_s24, %s2477_s6 }
  0x5f   : > { %p2474_p9 = pnand %p2472_p7, %p2458_p5  ;;  %p2480_p11 = scmp.lt.s32.totalorder %s2478_s22, %s2471_s26 }
  0x61   : > { %p2475_p1 = pneg %p2474_p9  ;;  %p2481_p3 = por %p2480_p11, %p2479_p4 }
  0x63   : > { %p2482_p12 = pnand %p2481_p3, %p2475_p1 }
  0x65   : > { %2485 = shalt.err (!%p2482_p12)
}
  0x66   : > { %s2616_s23 = smov 64   ;;  %s2617_s19 = smov 4  }
  0x67   : > { %2276 = dma.hbm_to_vmem [thread:$0]  (!%p2783_p2), %s2841_s5, 2304, %s2843_s24, %s2850_s12, %s2616_s23, %s2616_s23, %s2617_s19  }
  0x68   : > { %413 = sbr.rel (%p2817_p10) target bundleno = 3196 (0xc7c), region = 56  ;;  %s2881_s20 = sand.u32 (!%p2817_p10), 1, %s2588_s13  }
  0x69   : > { %s3216_s1 = sshll.u32 (!%p2817_p10), %s2881_s20, 3  ;;  %s416_s26 = scalar_lea.sflag (!%p2817_p10), [#allocation5], %s2881_s20 }
  0x6a   : > { %s2887_s30 = scalar_lea.vmem (!%p2817_p10), [#allocation4], %s3216_s1  ;;  %p3251_p5 = scmp.ne.s32.totalorder (!%p2817_p10), %s3233_s25, 0 }
  0x6f   : > { %2559 = dma.done.wait (%p3251_p5), %s416_s26, 128  }
  0x70   : > { %2561 = vsyncadd (%p3251_p5), %s416_s26, 4294967168  ;;  %s424_s5 = sand.u32 1, %s2576_s10   ;;  %p3252_p2 = scmp.ne.s32.totalorder %s3235_s27, 0 }
  0x71   : > { %s2263_s9 = smul.u32 144, %s424_s5  ;;  %s425_s21 = scalar_lea.sflag [#allocation8], %s424_s5 }
  0x73   : > { %s2894_s24 = scalar_lea.vmem [#allocation7], %s2263_s9 }
  0x74   : > { %2563 = dma.done.wait (%p3252_p2), %s425_s21, 2304  }
  0x75   : > { %2565 = vsyncadd (%p3252_p2), %s425_s21, 4294964992  ;;  %p501_p10 = scmp.lt.s32.totalorder %s2600_s16, 1  ;;  %p509_p8 = scmp.lt.s32.totalorder %s2596_s15, 1  ;;  %v2618_v1 = vmov 0.0  }
  0x76   : > { %s3253_s0 = sld [smem:[#allocation22_spill]]  ;;  %s3254_s2 = sld [smem:[#allocation24_spill]] }
  0x77   : > { %s502_s25 = scalar_select %p501_p10, %s2600_s16, 1 }
  0x78   : > { %s510_s12 = scalar_select %p509_p8, %s2596_s15, 1 }
  0x79   : > { %s1972_s6 = sshll.u32 %s502_s25, 3  ;;  %s3257_s17 = sld [smem:[#allocation28_spill]] }
  0x7a   : > { %s2070_s27 = sshll.u32 %s510_s12, 4  ;;  %s2074_s21 = sshll.u32 %s510_s12, 5 }
  0x7b   : > { %s2913_s28 = scalar_lea.vmem %s3198_s3, %s2070_s27  ;;  %s2918_s25 = scalar_lea.vmem %s3199_s4, %s2070_s27 }
  0x7c   : > { %s504_s19 = scalar_lea.vmem %s3253_s0, %s1972_s6  ;;  %s508_s9 = scalar_lea.vmem %s3254_s2, %s1972_s6 }
  0x7d   : > { %v535_v0 = vld [vmem:[%s508_s9] sm:$0xff]  ;;  %s3255_s0 = sld [smem:[#allocation25_spill]]  ;;  %s3256_s12 = sld [smem:[#allocation26_spill]] }
  0x7e   : > { %vm536_vm0 = vcmp.ne.s32.totalorder %v535_v0, 0  ;;  %s3258_s9 = sshll.u32 %s2881_s20, 3  ;;  %p1985_p6 = scmp.ne.s32.totalorder %s2596_s15, 0 }
  0x7f   : > { %v2931_v2 = vsel %vm536_vm0, 1.0, %v2618_v1  ;;  %s2936_s18 = scalar_lea.vmem %s3257_s17, %s2074_s21  ;;  %s2940_s2 = scalar_lea.vmem [#allocation9], %s3258_s9  ;;  %v543_v3 = vld [vmem:[%s504_s19] sm:$0xff] (!%p1985_p6)  ;;  %vm546_vm1 = vcmask (!%p1985_p6), 261120   ;;  %v2619_v6 = vmov (!%p1985_p6), 0.0  }
  0x80   : > { %542 = sbr.rel (%p1985_p6) target bundleno = 135 (0x87), region = 68  ;;  %v544_v4 = vld [vmem:[%s2887_s30] sm:$0xff] (!%p1985_p6)  ;;  %548 = vst.msk [vmem:[#allocation3] sm:$0xff] (!%p1985_p6), %vm546_vm1, %v2619_v6  ;;  %549 = vst.msk [vmem:[#allocation3 + $0x8] sm:$0xff] (!%p1985_p6), %vm546_vm1, %v2619_v6 }
  0x81   : > { %v545_v5 = vadd.f32 (!%p1985_p6), %v544_v4, %v543_v3 }
  0x83   : > { %s2923_s8 = scalar_lea.vmem %s3255_s0, %s2070_s27  ;;  %s2928_s5 = scalar_lea.vmem %s3256_s12, %s2070_s27  ;;  %547 = vst.msk [vmem:[#allocation2] sm:$0xff] (!%p1985_p6), %vm546_vm1, %v545_v5 }
  0x87 PF: > { %vm553_vm2 = vcmask 261120   ;;  %2133 = vmatprep.subr.bf16.mxu1 %v2618_v1  ;;  %2125 = vmatprep.subr.bf16.mxu0 %v2618_v1  ;;  %v2382_v14 = vld [vmem:[%s2923_s8] sm:$0xff]   ;;  %v2383_v16 = vld [vmem:[%s2923_s8 + $0x8] sm:$0xff]   ;;  %vm2620_vm3 = vmmov 0   ;;  %v568_v21 = vlaneseq  ;;  %vm712_vm4 = vcmask 130048   ;;  %s2621_s0 = smov 112  }
  0x88   : > { %v2384_v15 = vld [vmem:[%s2918_s25] sm:$0xff]   ;;  %2134 = vmatpush3.bf16.msra.mxu1 %v2382_v14  ;;  %2137 = vmatprep.mubr.msk.bf16.mxu1 %vm2620_vm3, %v2618_v1  ;;  %v2385_v17 = vld [vmem:[%s2918_s25 + $0x8] sm:$0xff]   ;;  %vm760_vm5 = vcmask 64512   ;;  %s2622_s8 = smov 96   ;;  %vm779_vm6 = vcmask 1043456   ;;  %s2623_s30 = smov 80  }
  0x89   : > { %2135 = vmatprep.subr.bf16.mxu1 %v2618_v1  ;;  %2126 = vmatpush3.bf16.msra.mxu0 %v2384_v15  ;;  %v2969_v23 = vshrl.u32 %v568_v21, 7  ;;  %v2973_v25 = vld [vmem:[%s2913_s28] sm:$0xff]  ;;  %v2387_v21 = vld [vmem:[%s2928_s5 + $0x8] sm:$0xff]   ;;  %vm1693_vm7 = vcmask 523264   ;;  %p2065_p13 = scmp.ne.s32.totalorder %s2596_s15, 1 }
  0x8a   : > { %v2944_v7 = vld [vmem:[#allocation2] sm:$0xff]  ;;  %2127 = vmatprep.subr.bf16.mxu0 %v2618_v1  ;;  %2129 = vmatprep.mubr.msk.bf16.mxu0 %vm2620_vm3, %v2618_v1 }
  0x8b   : > { %v554_v8 = vsel %vm553_vm2, %v2944_v7, 0.0  ;;  %v642_v18 = vpack.c.bf16 %v2944_v7, %v2944_v7  ;;  %v570_v24 = vsub.s32 0, %v2969_v23  ;;  %v575_v26 = vsub.s32 1, %v2969_v23 }
  0x8c   : > { %555 = vadd.xlane.f32.xlu0 %v554_v8  ;;  %2136 = vmatpush3.bf16.msra.mxu1 %v2383_v16  ;;  %v649_v34 = vsub.s32 3, %v2969_v23  ;;  %v585_v43 = vsub.s32 2, %v2969_v23 }
  0x8d   : > { %2128 = vmatpush3.bf16.msra.mxu0 %v2385_v17  ;;  %2147 = vmatprep.subr.bf16.mxu1 %v2618_v1  ;;  %v2977_v27 = vrot.slane %v2973_v25, %v570_v24  ;;  %v2980_v30 = vrot.slane %v2973_v25, %v575_v26 }
  0x8e   : > { %2141 = vmatprep.subr.bf16.mxu0 %v2618_v1  ;;  %v650_v35 = vrot.slane %v2973_v25, %v649_v34  ;;  %v586_v44 = vrot.slane %v2973_v25, %v585_v43 }
  0x8f   : > { %2138 = vmatmul.mubr.msk.bf16.vlgmr.msra.gmra.mrb[0].mxu1 %vm553_vm2, %v642_v18 }
  0x90   : > { %2149 = vmatprep.mubr.msk.bf16.mxu1 %vm2620_vm3, %v2618_v1 }
 0x119   : > { %v556_v9 = vpop.xlane.xlu0 %555 }
 0x11a   : > { %v558_v10 = vmul.f32 0.03125, %v556_v9 }
 0x11c   : > { %v559_v11 = vsub.f32 %v2944_v7, %v558_v10 }
 0x11e   : > { %v560_v12 = vmul.f32 %v559_v11, %v559_v11 }
 0x120   : > { %v561_v13 = vsel %vm553_vm2, %v560_v12, 0.0 }
 0x121   : > { %562 = vadd.xlane.f32.xlu0 %v561_v13 }
 0x162   : > { %v700_v36 = vpop.f32.mrb[0].mxu1 }
 0x163   : > { %v701_v37 = vadd.f32 %v700_v36, %v650_v35  ;;  %v2139_v38 = vpop.f32.mrb[1].mxu1 }
 0x164   : > { %v703_v39 = vpop.f32.mrb[2].mxu1 }
 0x165   : > { %v707_v40 = vpack.c.bf16 %v701_v37, %v701_v37  ;;  %v2140_v41 = vpop.f32.mrb[3].mxu1 }
 0x167   : > { %827 = vrot.lane.b32.xlu1 %v707_v40, %s2621_s0  ;;  %v717_v42 = vsel %vm712_vm4, %v707_v40, 0 }
 0x1ae   : > { %v563_v19 = vpop.xlane.xlu0 %562 }
 0x1af   : > { %v564_v20 = vmul.f32 0.03125, %v563_v19 }
 0x1b1   : > { %v565_v22 = vadd.f32 1e-05, %v564_v20 }
 0x1b3   : > { %2410 = vrsqrt.f32 %v565_v22 }
 0x1bd   : > { %v2411_v28 = vpop.eup %2410 }
 0x1be   : > { %v567_v29 = vmul.f32 %v2411_v28, %v559_v11 }
 0x1c0   : > { %v572_v31 = vmul.f32 %v2977_v27, %v567_v29 }
 0x1c2   : > { %v577_v32 = vadd.f32 %v2980_v30, %v572_v31  ;;  %v2386_v31 = vld [vmem:[%s2928_s5] sm:$0xff]  }
 0x1c4   : > { %v578_v33 = vpack.c.bf16 %v577_v32, %v577_v32 }
 0x1c6   : > { %2130 = vmatmul.mubr.msk.bf16.vlgmr.msra.gmra.mrb[0].mxu0 %vm553_vm2, %v578_v33 }
 0x1c7   : > { %2143 = vmatprep.mubr.msk.bf16.mxu0 %vm2620_vm3, %v2618_v1  ;;  %2142 = vmatpush3.bf16.xpose.msra.mxu0 %v717_v42 }
 0x1c8   : > { %2153 = vmatprep.subr.bf16.mxu0 %v2618_v1 }
 0x1d9   : > { %v828_v46 = vpop.permute.xlu1 %827 }
 0x1da   : > { %v833_v52 = vsel %vm712_vm4, %v828_v46, 0 }
 0x299   : > { %v636_v45 = vpop.f32.mrb[0].mxu0 }
 0x29a   : > { %v637_v47 = vadd.f32 %v636_v45, %v586_v44  ;;  %v2131_v48 = vpop.f32.mrb[1].mxu0 }
 0x29b   : > { %v639_v49 = vpop.f32.mrb[2].mxu0 }
 0x29c   : > { %v706_v50 = vpack.c.bf16 %v637_v47, %v637_v47  ;;  %v2132_v51 = vpop.f32.mrb[3].mxu0  ;;  %v1037_v47 = vsub.s32 4, %v2969_v23 }
 0x29e   : > { %825 = vrot.lane.b32.xlu1 %v706_v50, %s2621_s0  ;;  %2144 = vmatmul.mubr.msk.bf16.vlgmr.msra.gmra.mrb[4].mxu0 %vm712_vm4, %v706_v50  ;;  %v1038_v48 = vrot.slane %v2973_v25, %v1037_v47  ;;  %v2399_v47 = vld [vmem:[%s2894_s24 + $0x58] sm:$0xff]  }
 0x29f   : > { %2154 = vmatpush3.bf16.xpose.msra.mxu0 %v833_v52  ;;  %2155 = vmatprep.mubr.msk.bf16.mxu0 %vm2620_vm3, %v2618_v1 }
 0x2a0   : > { %2165 = vmatprep.subr.bf16.mxu0 %v2618_v1 }
 0x310   : > { %v826_v53 = vpop.permute.xlu1 %825 }
 0x311   : > { %2156 = vmatmul.mubr.msk.bf16.vlgmr.msra.gmra.mrb[8].mxu0 %vm712_vm4, %v826_v53 }
 0x312   : > { %2167 = vmatprep.mubr.msk.bf16.mxu0 %vm2620_vm3, %v2618_v1  ;;  %2166 = vmatpush3.bf16.msra.mxu0 %v2387_v21  ;;  %v1082_v21 = vsub.s32 6, %v2969_v23 }
 0x313   : > { %2177 = vmatprep.subr.bf16.mxu0 %v2618_v1 }
 0x371   : > { %v753_v54 = vpop.f32.mrb[4].mxu0 }
 0x372   : > { %v759_v55 = vmul.f32 0.25, %v753_v54  ;;  %v2145_v56 = vpop.f32.mrb[5].mxu0 }
 0x373   : > { %v756_v57 = vpop.f32.mrb[6].mxu0 }
 0x374   : > { %v2146_v58 = vpop.f32.mrb[7].mxu0  ;;  %v761_v59 = vsel %vm760_vm5, %v759_v55, -inf  ;;  %v2624_v57 = vmov 0  }
 0x375   : > { %762 = vmax.xlane.f32.xlu0 %v761_v59  ;;  %2380 = vset.pattern.permute.xlu1 %v2624_v57 }
 0x376   : > { %2381 = vset.pattern.permute.xlu0 %v2624_v57 }
 0x38b   : > { %774 = vrot.lane.b32.xlu0 %v707_v40, %s2622_s8 }
 0x3e4   : > { %v869_v60 = vpop.f32.mrb[8].mxu0 }
 0x3e5   : > { %v875_v61 = vmul.f32 0.25, %v869_v60  ;;  %v2157_v62 = vpop.f32.mrb[9].mxu0 }
 0x3e6   : > { %v872_v63 = vpop.f32.mrb[10].mxu0 }
 0x3e7   : > { %v2158_v0 = vpop.f32.mrb[11].mxu0  ;;  %v876_v3 = vsel %vm760_vm5, %v875_v61, -inf }
 0x3e8   : > { %877 = vmax.xlane.f32.xlu1 %v876_v3 }
 0x402   : > { %v763_v4 = vpop.xlane.xlu0 %762 }
 0x403   : > { %v764_v5 = vsub.f32 %v759_v55, %v763_v4 }
 0x405   : > { %v765_v6 = vmul.f32 1.442695, %v764_v5 }
 0x406   : > { %v775_v8 = vpop.permute.xlu0 %774 }
 0x407   : > { %2412 = vpow2.f32 %v765_v6  ;;  %v781_v9 = vsel %vm779_vm6, %v775_v8, 0 }
 0x408   : > { %2148 = vmatpush3.bf16.msra.mxu1 %v781_v9 }
 0x409   : > { %2159 = vmatprep.subr.bf16.mxu1 %v2618_v1 }
 0x411   : > { %v2413_v10 = vpop.eup %2412 }
 0x412   : > { %v767_v11 = vsel %vm760_vm5, %v2413_v10, 0.0 }
 0x413   : > { %768 = vadd.xlane.f32.xlu0 %v767_v11 }
 0x475   : > { %v878_v12 = vpop.xlane.xlu1 %877 }
 0x476   : > { %v879_v13 = vsub.f32 %v875_v61, %v878_v12 }
 0x478   : > { %v880_v14 = vmul.f32 1.442695, %v879_v13 }
 0x47a   : > { %2414 = vpow2.f32 %v880_v14  ;;  %v2388_v14 = vld [vmem:[%s2894_s24 + $0x10] sm:$0xff]  }
 0x484   : > { %v2415_v15 = vpop.eup %2414 }
 0x485   : > { %v882_v16 = vsel %vm760_vm5, %v2415_v15, 0.0 }
 0x486   : > { %883 = vadd.xlane.f32.xlu0 %v882_v16  ;;  %v2391_v16 = vld [vmem:[%s2894_s24 + $0x8] sm:$0xff]  }
 0x49c   : > { %888 = vrot.lane.b32.xlu0 %v707_v40, %s2623_s30 }
 0x4a0   : > { %v769_v17 = vpop.xlane.xlu0 %768 }
 0x4a1   : > { %2416 = vrcp.f32 %v769_v17 }
 0x4ab   : > { %v2417_v18 = vpop.eup %2416 }
 0x4ac   : > { %v771_v19 = vmul.f32 %v2417_v18, %v2413_v10 }
 0x4ae   : > { %v772_v20 = vpack.c.bf16 %v771_v19, %v771_v19 }
 0x4b0   : > { %2150 = vmatmul.mubr.msk.bf16.vlgmr.msra.gmra.mrb[4].mxu1 %vm760_vm5, %v772_v20  ;;  %v1077_v20 = vsub.s32 5, %v2969_v23 }
 0x4b1   : > { %2161 = vmatprep.mubr.msk.bf16.mxu1 %vm2620_vm3, %v2618_v1 }
 0x513   : > { %v884_v22 = vpop.xlane.xlu0 %883 }
 0x514   : > { %2418 = vrcp.f32 %v884_v22  ;;  %v3053_v22 = vrot.slane %v2973_v25, %v1077_v20 }
 0x517   : > { %v889_v24 = vpop.permute.xlu0 %888 }
 0x518   : > { %v894_v26 = vsel %vm779_vm6, %v889_v24, 0 }
 0x519   : > { %2160 = vmatpush3.bf16.msra.mxu1 %v894_v26  ;;  %v3056_v26 = vrot.slane %v2973_v25, %v1082_v21 }
 0x51a   : > { %2171 = vmatprep.subr.bf16.mxu1 %v2618_v1 }
 0x51e   : > { %v2419_v28 = vpop.eup %2418 }
 0x51f   : > { %v886_v29 = vmul.f32 %v2419_v28, %v2415_v15  ;;  %v2389_v15 = vld [vmem:[%s2894_s24] sm:$0xff]  }
 0x521   : > { %v887_v32 = vpack.c.bf16 %v886_v29, %v886_v29 }
 0x523   : > { %2162 = vmatmul.mubr.msk.bf16.vlgmr.msra.gmra.mrb[8].mxu1 %vm760_vm5, %v887_v32  ;;  %v2392_v32 = vld [vmem:[%s2894_s24 + $0x20] sm:$0xff]  }
 0x524   : > { %2172 = vmatpush3.bf16.msra.mxu1 %v2386_v31  ;;  %2173 = vmatprep.mubr.msk.bf16.mxu1 %vm2620_vm3, %v2618_v1 }
 0x525   : > { %2185 = vmatprep.subr.bf16.mxu1 %v2618_v1 }
 0x583   : > { %v817_v33 = vpop.f32.mrb[4].mxu1 }
 0x584   : > { %v823_v34 = vpack.c.bf16 %v817_v33, %v817_v33  ;;  %v2151_v35 = vpop.f32.mrb[5].mxu1 }
 0x585   : > { %v820_v36 = vpop.f32.mrb[6].mxu1  ;;  %v2393_v35 = vld [vmem:[%s2894_s24 + $0x30] sm:$0xff]  }
 0x586   : > { %v2152_v37 = vpop.f32.mrb[7].mxu1  ;;  %2174 = vmatmul.mubr.msk.bf16.vlgmr.msra.gmra.mrb[12].mxu1 %vm712_vm4, %v823_v34 }
 0x587   : > { %2189 = vmatprep.mubr.msk.bf16.mxu1 %vm2620_vm3, %v2618_v1  ;;  %2186 = vmatpush3.bf16.msra.mxu1 %v2389_v15 }
 0x588   : > { %2187 = vmatprep.subr.bf16.mxu1 %v2618_v1 }
 0x58b   : > { %2188 = vmatpush3.bf16.msra.mxu1 %v2391_v16 }
 0x58c   : > { %2201 = vmatprep.subr.bf16.mxu1 %v2618_v1 }
 0x5f6   : > { %v930_v38 = vpop.f32.mrb[8].mxu1 }
 0x5f7   : > { %v936_v39 = vpack.c.bf16 %v930_v38, %v930_v38  ;;  %v2163_v40 = vpop.f32.mrb[9].mxu1  ;;  %v2394_v38 = vld [vmem:[%s2894_s24 + $0x28] sm:$0xff]  }
 0x5f8   : > { %v933_v41 = vpop.f32.mrb[10].mxu1 }
 0x5f9   : > { %v2164_v42 = vpop.f32.mrb[11].mxu1  ;;  %2168 = vmatmul.mubr.msk.bf16.vlgmr.msra.gmra.mrb[12].mxu0 %vm712_vm4, %v936_v39  ;;  %v2395_v39 = vld [vmem:[%s2894_s24 + $0x38] sm:$0xff]  }
 0x5fa   : > { %2181 = vmatprep.mubr.msk.bf16.mxu0 %vm2620_vm3, %v2618_v1  ;;  %2178 = vmatpush3.bf16.msra.mxu0 %v2388_v14  ;;  %v2396_v42 = vld [vmem:[%s2894_s24 + $0x40] sm:$0xff]  }
 0x5fb   : > { %2179 = vmatprep.subr.bf16.mxu0 %v2618_v1 }
 0x659   : > { %v1029_v43 = vpop.f32.mrb[12].mxu1 }
 0x65a   : > { %v2175_v44 = vpop.f32.mrb[13].mxu1 }
 0x65b   : > { %v1032_v45 = vpop.f32.mrb[14].mxu1 }
 0x65c   : > { %v2176_v46 = vpop.f32.mrb[15].mxu1 }
 0x65d   : > { %v2398_v46 = vld [vmem:[%s2894_s24 + $0x48] sm:$0xff]  }
 0x6cc   : > { %v980_v49 = vpop.f32.mrb[12].mxu0 }
 0x6cd   : > { %v1030_v50 = vadd.f32 %v1029_v43, %v980_v49  ;;  %v2169_v51 = vpop.f32.mrb[13].mxu0  ;;  %v2397_v43 = vld [vmem:[%s2894_s24 + $0x50] sm:$0xff]  }
 0x6ce   : > { %v983_v52 = vpop.f32.mrb[14].mxu0  ;;  %v2401_v51 = vld [vmem:[%s2894_s24 + $0x70] sm:$0xff]  }
 0x6cf   : > { %v1039_v53 = vadd.f32 %v1038_v48, %v1030_v50  ;;  %v2170_v54 = vpop.f32.mrb[15].mxu0  ;;  %v2400_v50 = vld [vmem:[%s2894_s24 + $0x60] sm:$0xff]  }
 0x6d0   : > { %v2402_v54 = vld [vmem:[%s2894_s24 + $0x68] sm:$0xff]  }
 0x6d1   : > { %v1040_v55 = vadd.f32 %v1039_v53, %v2944_v7 }
 0x6d3   : > { %v1041_v56 = vsel %vm553_vm2, %v1040_v55, 0.0 }
 0x6d4   : > { %1042 = vadd.xlane.f32.xlu1 %v1041_v56 }
 0x6e5   : > { %1058 = vperm.xlu1 %2380, %v2931_v2  }
 0x761   : > { %v1043_v58 = vpop.xlane.xlu1 %1042 }
 0x762   : > { %v1044_v59 = vmul.f32 0.03125, %v1043_v58  ;;  %v2404_v58 = vld [vmem:[%s2894_s24 + $0x80] sm:$0xff]  }
 0x764   : > { %v1045_v60 = vsub.f32 %v1040_v55, %v1044_v59  ;;  %v2403_v55 = vld [vmem:[%s2894_s24 + $0x78] sm:$0xff]  }
 0x765   : > { %v3032_v6 = vpop.permute.xlu1 %1058 }
 0x766   : > { %v1046_v61 = vmul.f32 %v1045_v60, %v1045_v60 }
 0x768   : > { %v1047_v62 = vsel %vm553_vm2, %v1046_v61, 0.0  ;;  %v2405_v61 = vld [vmem:[%s2894_s24 + $0x88] sm:$0xff]  }
 0x769   : > { %1048 = vadd.xlane.f32.xlu0 %v1047_v62 }
 0x7f6   : > { %v1049_v63 = vpop.xlane.xlu0 %1048 }
 0x7f7   : > { %v1050_v0 = vmul.f32 0.03125, %v1049_v63 }
 0x7f9   : > { %v1051_v3 = vadd.f32 1e-05, %v1050_v0  ;;  %v2406_v0 = vld [vmem:[%s2936_s18] sm:$0xff]  }
 0x7fb   : > { %2420 = vrsqrt.f32 %v1051_v3  ;;  %v2407_v3 = vld [vmem:[%s2936_s18 + $0x8] sm:$0xff]  }
 0x805   : > { %v2421_v7 = vpop.eup %2420 }
 0x806   : > { %v1053_v4 = vmul.f32 %v2421_v7, %v1045_v60  ;;  %v2408_v7 = vld [vmem:[%s2936_s18 + $0x10] sm:$0xff]  }
 0x808   : > { %v1054_v5 = vmul.f32 %v1053_v4, %v2977_v27  ;;  %v2409_v4 = vld [vmem:[%s2936_s18 + $0x18] sm:$0xff]  }
 0x80a   : > { %v1055_v2 = vadd.f32 %v1054_v5, %v2980_v30  ;;  %v2390_v30 = vld [vmem:[%s2894_s24 + $0x18] sm:$0xff]  }
 0x80b   : > { %2180 = vmatpush3.bf16.msra.mxu0 %v2390_v30 }
 0x80c   : > { %v3036_v8 = vmul.f32 %v3032_v6, %v1055_v2  ;;  %2193 = vmatprep.subr.bf16.mxu0 %v2618_v1 }
 0x80e   : > { %v1062_v9 = vsel %vm553_vm2, %v3036_v8, 0.0 }
 0x80f   : > { %1063 = vadd.xlane.f32.xlu1 %v1062_v9 }
 0x89c   : > { %v1064_v10 = vpop.xlane.xlu1 %1063 }
 0x89d   : > { %v1065_v11 = vmul.f32 0.03125, %v1064_v10 }
 0x89f   : > { %v1066_v12 = vsub.f32 %v3036_v8, %v1065_v11 }
 0x8a1   : > { %v1067_v13 = vmul.f32 %v1066_v12, %v1066_v12 }
 0x8a3   : > { %v1068_v27 = vsel %vm553_vm2, %v1067_v13, 0.0 }
 0x8a4   : > { %1069 = vadd.xlane.f32.xlu0 %v1068_v27 }
 0x931   : > { %v1070_v17 = vpop.xlane.xlu0 %1069 }
 0x932   : > { %v1071_v18 = vmul.f32 0.03125, %v1070_v17 }
 0x934   : > { %v1072_v19 = vadd.f32 1e-05, %v1071_v18 }
 0x936   : > { %2422 = vrsqrt.f32 %v1072_v19 }
 0x940   : > { %v2423_v24 = vpop.eup %2422 }
 0x941   : > { %v1074_v28 = vmul.f32 %v2423_v24, %v1066_v12 }
 0x943   : > { %v1079_v29 = vmul.f32 %v3053_v22, %v1074_v28 }
 0x945   : > { %v1084_v31 = vadd.f32 %v3056_v26, %v1079_v29 }
 0x947   : > { %1085 = vst.msk [vmem:[#allocation3 + $0x4] sm:$0xff] %vm553_vm2, %v1084_v31 }
 0x94e   : > { %v1092_v33 = vld [vmem:[#allocation3 + $0x1] sm:$0xff] }
 0x94f   : > { %v1086_v34 = vld [vmem:[#allocation3] sm:$0xff]  ;;  %v1093_v36 = vpack.c.bf16 %v1092_v33, %v1092_v33  ;;  %v1587_v62 = vld [vmem:[#allocation3 + $0x8] sm:$0xff] }
 0x950   : > { %v1087_v37 = vpack.c.bf16 %v1086_v34, %v1086_v34  ;;  %v1209_v40 = vld [vmem:[#allocation3 + $0x2] sm:$0xff]  ;;  %v1588_v63 = vpack.c.bf16 %v1587_v62, %v1587_v62 }
 0x951   : > { %2182 = vmatmul.mubr.msk.bf16.vlgmr.msra.gmra.mrb[16].mxu0 %vm553_vm2, %v1093_v36  ;;  %v1272_v41 = vld [vmem:[#allocation3 + $0x3] sm:$0xff]  ;;  %v1210_v44 = vpack.c.bf16 %v1209_v40, %v1209_v40 }
 0x952   : > { %2190 = vmatmul.mubr.msk.bf16.vlgmr.msra.gmra.mrb[16].mxu1 %vm553_vm2, %v1087_v37  ;;  %2194 = vmatpush3.bf16.msra.mxu0 %v2392_v32  ;;  %v1273_v45 = vpack.c.bf16 %v1272_v41, %v1272_v41  ;;  %v1335_v48 = vld [vmem:[#allocation3 + $0x4] sm:$0xff] }
 0x953   : > { %2202 = vmatpush3.bf16.msra.mxu1 %v2393_v35  ;;  %2195 = vmatprep.subr.bf16.mxu0 %v2618_v1  ;;  %v1398_v49 = vld [vmem:[#allocation3 + $0x5] sm:$0xff]  ;;  %v1336_v52 = vpack.c.bf16 %v1335_v48, %v1335_v48 }
 0x954   : > { %2203 = vmatprep.subr.bf16.mxu1 %v2618_v1  ;;  %2197 = vmatprep.mubr.msk.bf16.mxu0 %vm2620_vm3, %v2618_v1  ;;  %v1399_v53 = vpack.c.bf16 %v1398_v49, %v1398_v49  ;;  %v1461_v56 = vld [vmem:[#allocation3 + $0x6] sm:$0xff]  ;;  %v1652_v49 = vsub.s32 7, %v2969_v23 }
 0x955   : > { %2205 = vmatprep.mubr.msk.bf16.mxu1 %vm2620_vm3, %v2618_v1  ;;  %v1524_v57 = vld [vmem:[#allocation3 + $0x7] sm:$0xff]  ;;  %v1462_v59 = vpack.c.bf16 %v1461_v56, %v1461_v56 }
 0x956   : > { %2196 = vmatpush3.bf16.msra.mxu0 %v2394_v38  ;;  %v1525_v60 = vpack.c.bf16 %v1524_v57, %v1524_v57 }
 0x957   : > { %2204 = vmatpush3.bf16.msra.mxu1 %v2395_v39  ;;  %2209 = vmatprep.subr.bf16.mxu0 %v2618_v1 }
 0x958   : > { %2217 = vmatprep.subr.bf16.mxu1 %v2618_v1 }
 0x959   : > { %2198 = vmatmul.mubr.msk.bf16.vlgmr.msra.gmra.mrb[20].mxu0 %vm553_vm2, %v1210_v44 }
 0x95a   : > { %2206 = vmatmul.mubr.msk.bf16.vlgmr.msra.gmra.mrb[20].mxu1 %vm553_vm2, %v1273_v45  ;;  %2210 = vmatpush3.bf16.msra.mxu0 %v2396_v42 }
 0x95b   : > { %2218 = vmatpush3.bf16.msra.mxu1 %v2397_v43  ;;  %2211 = vmatprep.subr.bf16.mxu0 %v2618_v1 }
 0x95c   : > { %2219 = vmatprep.subr.bf16.mxu1 %v2618_v1  ;;  %2213 = vmatprep.mubr.msk.bf16.mxu0 %vm2620_vm3, %v2618_v1 }
 0x95d   : > { %2221 = vmatprep.mubr.msk.bf16.mxu1 %vm2620_vm3, %v2618_v1 }
 0x95e   : > { %2212 = vmatpush3.bf16.msra.mxu0 %v2398_v46 }
 0x95f   : > { %2220 = vmatpush3.bf16.msra.mxu1 %v2399_v47  ;;  %2225 = vmatprep.subr.bf16.mxu0 %v2618_v1 }
 0x960   : > { %2233 = vmatprep.subr.bf16.mxu1 %v2618_v1 }
 0x961   : > { %2214 = vmatmul.mubr.msk.bf16.vlgmr.msra.gmra.mrb[24].mxu0 %vm553_vm2, %v1336_v52 }
 0x962   : > { %2222 = vmatmul.mubr.msk.bf16.vlgmr.msra.gmra.mrb[24].mxu1 %vm553_vm2, %v1399_v53  ;;  %2226 = vmatpush3.bf16.msra.mxu0 %v2400_v50  ;;  %v1653_v50 = vrot.slane %v2973_v25, %v1652_v49 }
 0x963   : > { %2234 = vmatpush3.bf16.msra.mxu1 %v2401_v51  ;;  %2227 = vmatprep.subr.bf16.mxu0 %v2618_v1 }
 0x964   : > { %2235 = vmatprep.subr.bf16.mxu1 %v2618_v1  ;;  %2229 = vmatprep.mubr.msk.bf16.mxu0 %vm2620_vm3, %v2618_v1 }
 0x965   : > { %2237 = vmatprep.mubr.msk.bf16.mxu1 %vm2620_vm3, %v2618_v1 }
 0x966   : > { %2228 = vmatpush3.bf16.msra.mxu0 %v2402_v54 }
 0x967   : > { %2236 = vmatpush3.bf16.msra.mxu1 %v2403_v55  ;;  %2241 = vmatprep.subr.bf16.mxu0 %v2618_v1 }
 0x968   : > { %2249 = vmatprep.subr.bf16.mxu1 %v2618_v1 }
 0x969   : > { %2230 = vmatmul.mubr.msk.bf16.vlgmr.msra.gmra.mrb[28].mxu0 %vm553_vm2, %v1462_v59  ;;  %v2059_v59 = vld [vmem:[%s2913_s28 + $0x8] ss:$0 sm:$0xff] }
 0x96a   : > { %2238 = vmatmul.mubr.msk.bf16.vlgmr.msra.gmra.mrb[28].mxu1 %vm553_vm2, %v1525_v60  ;;  %2242 = vmatpush3.bf16.msra.mxu0 %v2404_v58 }
 0x96b   : > { %2245 = vmatprep.mubr.msk.bf16.mxu0 %vm2620_vm3, %v2618_v1  ;;  %2243 = vmatprep.subr.bf16.mxu0 %v2618_v1 }
 0x96c   : > { %2257 = vmatprep.mubr.msk.bf16.mxu1 %vm2620_vm3, %v2618_v1  ;;  %2250 = vmatpush3.bf16.msra.mxu1 %v2406_v0 }
 0x96d   : > { %2251 = vmatprep.subr.bf16.mxu1 %v2618_v1 }
 0x96e   : > { %2244 = vmatpush3.bf16.msra.mxu0 %v2405_v61 }
 0x970   : > { %2252 = vmatpush3.bf16.msra.mxu1 %v2407_v3 }
 0x971   : > { %2246 = vmatmul.mubr.msk.bf16.vlgmr.msra.gmra.mrb[32].mxu0 %vm553_vm2, %v1588_v63  ;;  %2253 = vmatprep.subr.bf16.mxu1 %v2618_v1 }
 0x974   : > { %2254 = vmatpush3.bf16.msra.mxu1 %v2408_v7 }
 0x975   : > { %2255 = vmatprep.subr.bf16.mxu1 %v2618_v1 }
 0x978   : > { %2256 = vmatpush3.bf16.msra.mxu1 %v2409_v4 }
 0xa24   : > { %v1148_v5 = vpop.f32.mrb[16].mxu0 }
 0xa25   : > { %v1203_v2 = vpop.f32.mrb[16].mxu1  ;;  %v2183_v10 = vpop.f32.mrb[17].mxu0 }
 0xa26   : > { %v1204_v9 = vadd.f32 %v1203_v2, %v1148_v5  ;;  %v2191_v11 = vpop.f32.mrb[17].mxu1  ;;  %v1151_v12 = vpop.f32.mrb[18].mxu0 }
 0xa27   : > { %v1206_v13 = vpop.f32.mrb[18].mxu1  ;;  %v2184_v27 = vpop.f32.mrb[19].mxu0 }
 0xa28   : > { %v2192_v14 = vpop.f32.mrb[19].mxu1 }
 0xa2c   : > { %v1265_v15 = vpop.f32.mrb[20].mxu0 }
 0xa2d   : > { %v1328_v30 = vpop.f32.mrb[20].mxu1  ;;  %v1271_v16 = vadd.f32 %v1265_v15, %v1204_v9  ;;  %v2199_v17 = vpop.f32.mrb[21].mxu0 }
 0xa2e   : > { %v2207_v18 = vpop.f32.mrb[21].mxu1  ;;  %v1268_v19 = vpop.f32.mrb[22].mxu0 }
 0xa2f   : > { %v1331_v20 = vpop.f32.mrb[22].mxu1  ;;  %v1334_v21 = vadd.f32 %v1328_v30, %v1271_v16  ;;  %v2200_v1 = vpop.f32.mrb[23].mxu0 }
 0xa30   : > { %v2208_v24 = vpop.f32.mrb[23].mxu1 }
 0xa34   : > { %v1391_v28 = vpop.f32.mrb[24].mxu0 }
 0xa35   : > { %v1454_v29 = vpop.f32.mrb[24].mxu1  ;;  %v1397_v31 = vadd.f32 %v1391_v28, %v1334_v21  ;;  %v2215_v32 = vpop.f32.mrb[25].mxu0 }
 0xa36   : > { %v2223_v33 = vpop.f32.mrb[25].mxu1  ;;  %v1394_v34 = vpop.f32.mrb[26].mxu0 }
 0xa37   : > { %v1457_v35 = vpop.f32.mrb[26].mxu1  ;;  %v1460_v36 = vadd.f32 %v1454_v29, %v1397_v31  ;;  %v2216_v37 = vpop.f32.mrb[27].mxu0 }
 0xa38   : > { %v2224_v38 = vpop.f32.mrb[27].mxu1 }
 0xa3c   : > { %v1517_v39 = vpop.f32.mrb[28].mxu0 }
 0xa3d   : > { %v1580_v40 = vpop.f32.mrb[28].mxu1  ;;  %v1523_v41 = vadd.f32 %v1517_v39, %v1460_v36  ;;  %v2231_v42 = vpop.f32.mrb[29].mxu0 }
 0xa3e   : > { %v2239_v43 = vpop.f32.mrb[29].mxu1  ;;  %v1520_v44 = vpop.f32.mrb[30].mxu0 }
 0xa3f   : > { %v1583_v45 = vpop.f32.mrb[30].mxu1  ;;  %v1586_v46 = vadd.f32 %v1580_v40, %v1523_v41  ;;  %v2232_v47 = vpop.f32.mrb[31].mxu0 }
 0xa40   : > { %v2240_v48 = vpop.f32.mrb[31].mxu1 }
 0xa44   : > { %v1643_v51 = vpop.f32.mrb[32].mxu0 }
 0xa45   : > { %v1649_v52 = vadd.f32 %v1643_v51, %v1586_v46  ;;  %v2247_v53 = vpop.f32.mrb[33].mxu0 }
 0xa46   : > { %v1646_v54 = vpop.f32.mrb[34].mxu0 }
 0xa47   : > { %v1654_v55 = vadd.f32 %v1653_v50, %v1649_v52  ;;  %v2248_v56 = vpop.f32.mrb[35].mxu0 }
 0xa49   : > { %v1655_v57 = vmax.f32 %v1654_v55, 0.0 }
 0xa4b   : > { %v1656_v58 = vpack.c.bf16 %v1655_v57, %v1655_v57 }
 0xa4d   : > { %2258 = vmatmul.mubr.msk.bf16.vlgmr.msra.gmra.mrb[32].mxu1 %vm1693_vm7, %v1656_v58 }
 0xb20   : > { %v1731_v60 = vpop.f32.mrb[32].mxu1 }
 0xb21   : > { %v1732_v61 = vadd.f32 %v2059_v59, %v1731_v60  ;;  %v2259_v62 = vpop.f32.mrb[33].mxu1 }
 0xb22   : > { %v1734_v63 = vpop.f32.mrb[34].mxu1 }
 0xb23   : > { %v2260_v0 = vpop.f32.mrb[35].mxu1  ;;  %v1737_v23 = vadd.f32 %v1732_v61, %v3036_v8 }
 0xb25   : > { %v1738_v25 = vsel %vm553_vm2, %v1737_v23, 0.0 }
 0xb26   : > { %1739 = vadd.xlane.f32.xlu0 %v1738_v25 }
 0xbb3   : > { %v1740_v3 = vpop.xlane.xlu0 %1739 }
 0xbb4   : > { %v1741_v7 = vmul.f32 0.03125, %v1740_v3 }
 0xbb6   : > { %v1742_v4 = vsub.f32 %v1737_v23, %v1741_v7 }
 0xbb8   : > { %v1743_v5 = vmul.f32 %v1742_v4, %v1742_v4 }
 0xbba   : > { %v1744_v2 = vsel %vm553_vm2, %v1743_v5, 0.0 }
 0xbbb   : > { %1745 = vadd.xlane.f32.xlu0 %v1744_v2 }
 0xc48   : > { %v1746_v9 = vpop.xlane.xlu0 %1745 }
 0xc49   : > { %v1747_v10 = vmul.f32 0.03125, %v1746_v9 }
 0xc4b   : > { %v1748_v11 = vadd.f32 1e-05, %v1747_v10 }
 0xc4d   : > { %2424 = vrsqrt.f32 %v1748_v11 }
 0xc57   : > { %v2425_v12 = vpop.eup %2424 }
 0xc58   : > { %v1750_v13 = vmul.f32 %v2425_v12, %v1742_v4 }
 0xc5a   : > { %v1751_v27 = vmul.f32 %v1750_v13, %v3053_v22  ;;  %1758 = sbr.rel (%p2065_p13) target bundleno = 3169 (0xc61), region = 72 }
 0xc5c   : > { %v1752_v8 = vadd.f32 %v1751_v27, %v3056_v26 }
 0xc5e   : > { %v1753_v14 = vmul.f32 %v1752_v8, %v3032_v6 }
 0xc60   : > { %1754 = vst.msk [vmem:[#allocation2] sm:$0xff] %vm553_vm2, %v1753_v14  ;;  %1759 = vst.msk [vmem:[%s2940_s2] sm:$0xff] (!%p2065_p13), %vm553_vm2, %v1753_v14 }
 0xc61 PF: > { %s3259_s28 = sld [smem:[#allocation17_spill]]  ;;  %s2067_s24 = sshll.u32 %s2600_s16, 7 }
 0xc62   : > { %s3260_s21 = sld [smem:[#allocation29_spill]]  ;;  %s1774_s22 = sshll.u32 %s2940_s2, 4  ;;  %s1775_s22 = int_to_ptr.vmem [resolvable:$true] %s1774_s22 }
 0xc63   : > { %s1761_s23 = scalar_lea.sflag [#allocation6], %s2881_s20  ;;  %s2486_s6 = scalar_lea.vmem %s1775_s22, 128 }
 0xc64   : > { %p2487_p0 = scmp.ne.s32.totalorder %s1775_s22, %s2486_s6  ;;  %s2625_s15 = smov [#allocation9]  }
 0xc65   : > { %s2490_s26 = sshll.u32 %s2625_s15, 4  ;;  %s2491_s26 = int_to_ptr.vmem [resolvable:$false] %s2490_s26 }
 0xc66   : > { %s2492_s12 = scalar_lea.vmem %s2491_s26, 256  ;;  %p2493_p4 = scmp.lt.s32.totalorder %s1775_s22, %s2491_s26 }
 0xc67   : > { %p3261_p7 = scmp.ne.s32.totalorder %s3259_s28, 0  ;;  %p2494_p11 = scmp.lt.s32.totalorder %s2492_s12, %s2486_s6 }
 0xc68   : > { %s3137_s25 = scalar_lea.hbm %s3260_s21, %s2067_s24 }
 0xc69   : > { %p2488_p9 = pnand %p2487_p0, %p3261_p7  ;;  %p2495_p3 = por %p2494_p11, %p2493_p4 }
 0xc6b   : > { %p2489_p1 = pneg %p2488_p9 }
 0xc6d   : > { %p2496_p12 = pnand %p2495_p3, %p2489_p1 }
 0xc6f   : > { %2499 = shalt.err (!%p2496_p12)
}
 0xc70   : > { %s2500_s2 = scalar_lea.hbm %s3137_s25, 128  ;;  %s2504_s5 = scalar_lea.hbm %s3260_s21, 256 }
 0xc71   : > { %p2501_p5 = scmp.ne.s32.totalorder %s3137_s25, %s2500_s2  ;;  %p2505_p8 = scmp.lt.u32.totalorder %s3137_s25, %s3260_s21 }
 0xc72   : > { %p2506_p6 = scmp.lt.u32.totalorder %s2504_s5, %s2500_s2  ;;  %p2508_p0 = scmp.lt.u32.totalorder %s2500_s2, %s3137_s25 }
 0xc73   : > { %p2502_p2 = pnand %p2501_p5, %p3261_p7 }
 0xc74   : > { %p2507_p13 = por %p2506_p6, %p2505_p8 }
 0xc75   : > { %p2503_p10 = pneg %p2502_p2 }
 0xc76   : > { %p2509_p9 = por %p2508_p0, %p2507_p13 }
 0xc78   : > { %p2510_p1 = pnand %p2509_p9, %p2503_p10 }
 0xc7a   : > { %2513 = shalt.err (!%p2510_p1)
}
 0xc7b   : > { %2268 = dma.vmem_to_hbm [thread:$0]  (%p3261_p7), %s1775_s22, 128, %s3137_s25, %s1761_s23  }
 0xc7c PF: > { %s3262_s17 = sld [smem:[#allocation16_spill]]  ;;  %s3263_s18 = sld [smem:[#allocation13_spill]] }
 0xc7d   : > { %s3264_s9 = sld [smem:[#allocation18_spill]] }
 0xc82   : > { %p2282_p4 = scmp.ge.s32.totalorder %s3262_s17, 2  ;;  %s1786_s0 = sand.u32 1, %s3263_s18  }
 0xc83   : > { %p3265_p11 = scmp.ne.s32.totalorder %s3264_s9, 0  ;;  %s1787_s8 = scalar_lea.sflag [#allocation6], %s1786_s0 }
 0xc85   : > { %p2278_p3 = pnand %p2282_p4, %p3265_p11 }
 0xc87   : > { %2567 = dma.done.wait (!%p2278_p3), %s1787_s8, 128  }
 0xc88   : > { %2569 = vsyncadd (!%p2278_p3), %s1787_s8, 4294967168  ;;  %s28_s19 = sadd.s32 1, %s3262_s17   ;;  %s3266_s28 = sld [smem:[#allocation21_spill]] }
 0xc89   : > { %p25_p12 = scmp.ge.s32.totalorder %s28_s19, 6   ;;  %s3267_s15 = sld [smem:[#allocation14_spill]] }
 0xc8a   : > { %s3268_s16 = sld [smem:[#allocation15_spill]]  ;;  %s3269_s17 = sld [smem:[#allocation19_spill]] }
 0xc8b   : > { %s3270_s18 = sld [smem:[#allocation20_spill]]  ;;  %s3271_s30 = smov %s2576_s10 }
 0xc8c   : > { %s3272_s10 = smov %s2580_s11  ;;  %s3273_s11 = smov %s2834_s29 }
 0xc8d   : > { %s3274_s12 = smov %s2588_s13  ;;  %s3275_s13 = smov %s2592_s14 }
 0xc8e   : > { %s3276_s14 = smov %s3266_s28  ;;  %27 = sbr.rel (!%p25_p12) target bundleno = 20 (0x14), region = 151 }
 0xc95   :  { %1792 = vsyncpa [#allocation5], 1 }
 0xc96   :  { %1794 = vsyncpa [#allocation5 + $0x1], 1 }
 0xc97   :  { %1795 = vsyncpa [#allocation8], 1 }
 0xc98   :  { %1797 = vsyncpa [#allocation8 + $0x1], 1 }
 0xc99   :  { %1798 = vsyncpa [#allocation6], 1 }
 0xc9a   :  { %1800 = vsyncpa [#allocation6 + $0x1], 1 }

</bundles_post_ra>
